<compile_context>
chip_gen: v5e
topology: v5e:2x2
jax: 0.10.0
libtpu: 0.0.40
codegen_flags: <defaults>
</compile_context>

<pallas_src>
import jax
import jax.numpy as jnp
import numpy as np
from jax import lax
from jax.experimental import pallas as pl
from jax.experimental.pallas import tpu as pltpu

LANES = 128


def _align8(n):
    return (n + 7) & ~7


def _make_layout(S, Din, H, num_layers, num_dec):
    """8-row-aligned row offsets of every parameter inside the packed (R, 128) slab."""
    sections = [("ln_w", 1), ("ln_b", 1)]
    for l in range(num_layers):
        in_dim = Din if l == 0 else H
        sections.append((f"lstm_wih{l}", in_dim))   # (in_dim, 4H)
        sections.append((f"lstm_whh{l}", H))        # (H, 4H)
        sections.append((f"lstm_b{l}", 1))          # combined b_ih + b_hh, (1, 4H)
    for d in range(num_dec):
        sections.append((f"dec_w{d}", H))           # (H, fan_out), zero-padded to 128 lanes
        sections.append((f"dec_b{d}", 1))
    off, r = {}, 0
    for name, rows in sections:
        off[name] = r
        r += _align8(rows)
    return off, r


def pack_params(params, seq_len, input_dim):
    """Pack every parameter into one lane-padded f32 slab (a single HBM->VMEM DMA)."""
    H = params["lstm"][0][1].shape[0]
    num_layers = len(params["lstm"])
    num_dec = len(params["dec_w"])
    assert 4 * H <= LANES and seq_len * input_dim <= LANES
    off, total = _make_layout(seq_len, input_dim, H, num_layers, num_dec)
    slab = np.zeros((total, LANES), np.float32)

    def put(name, a):
        a = np.asarray(a, np.float32)
        slab[off[name]:off[name] + a.shape[0], :a.shape[1]] = a

    put("ln_w", np.asarray(params["ln_w"]).reshape(1, seq_len * input_dim))
    put("ln_b", np.asarray(params["ln_b"]).reshape(1, seq_len * input_dim))
    for l, (wih, whh, b) in enumerate(params["lstm"]):
        put(f"lstm_wih{l}", wih)
        put(f"lstm_whh{l}", whh)
        put(f"lstm_b{l}", np.asarray(b).reshape(1, -1))
    for d, (w, b) in enumerate(zip(params["dec_w"], params["dec_b"])):
        put(f"dec_w{d}", w)
        put(f"dec_b{d}", np.asarray(b).reshape(1, -1))
    return jnp.asarray(slab), off


# ------------------------------ Fused kernel ---------------------------------
def _make_fused_kernel(B, S, Din, H, Dout, num_layers, num_dec, off):
    F32 = jnp.float32
    SD = S * Din

    def kernel(x_ref, p_ref, o_ref):
        # ---- LayerNorm over the (seq_len*input_dim) slab per sample: one lane reduce ----
        x2 = x_ref[...].astype(F32)                                     # (B, S*Din)
        lnw = p_ref[off["ln_w"]:off["ln_w"] + 1, 0:SD]                  # (1, S*Din)
        lnb = p_ref[off["ln_b"]:off["ln_b"] + 1, 0:SD]
        mean = jnp.mean(x2, axis=1, keepdims=True)
        xc = x2 - mean
        var = jnp.mean(xc * xc, axis=1, keepdims=True)
        xn = xc * lax.rsqrt(var + 1e-5) * lnw + lnb                     # (B, S*Din)

        # ---- LSTM weights: static ref-view loads from the packed slab (done once) ----
        wih, whh, bias = [], [], []
        for l in range(num_layers):
            in_dim = Din if l == 0 else H
            r = off[f"lstm_wih{l}"]; wih.append(p_ref[r:r + in_dim, :])   # (in_dim, 4H)
            r = off[f"lstm_whh{l}"]; whh.append(p_ref[r:r + H, :])        # (H, 4H)
            r = off[f"lstm_b{l}"];   bias.append(p_ref[r:r + 1, :])       # (1, 4H)

        def gate_update(g, c):
            # g: (B, 4H) pre-activation, PyTorch gate order (i, f, g, o).
            sg = jax.nn.sigmoid(g)                 # full 128-lane EUP pass
            th = jnp.tanh(g)
            c_new = sg[:, H:2 * H] * c + sg[:, 0:H] * th[:, 2 * H:3 * H]
            h_new = sg[:, 3 * H:4 * H] * jnp.tanh(c_new)
            return h_new, c_new

        zero = jnp.zeros((B, H), F32)
        h = [zero] * num_layers
        c = [zero] * num_layers

        # ---- Wavefront-interleaved recurrence (fully unrolled): wave w runs layer l's
        # step t = w - l.  Per-wave steps are independent -> their chains overlap. ----
        for wv in range(S + num_layers - 1):
            h_prev = list(h)                       # snapshot: h_{t-1} / lower layer's h_t
            for l in range(num_layers):
                t = wv - l
                if 0 <= t < S:
                    xin = xn[:, t * Din:(t + 1) * Din] if l == 0 else h_prev[l - 1]
                    # Input-side projection + bias: independent of h[l] -> off the
                    # recurrent dependency chain (free MXU/VPU filler).
                    gin = jnp.dot(xin, wih[l], preferred_element_type=F32) + bias[l]
                    # Only the recurrent matmul + one add sit on the serial chain.
                    g = gin + jnp.dot(h_prev[l], whh[l], preferred_element_type=F32)
                    h[l], c[l] = gate_update(g, c[l])
        # TODO(synk): inter-layer dropout (training-only; dropout=0.0 here) and the BiLSTM
        # branch are not implemented; hT[-1] is the last layer's final hidden state.

        # ---- decoder: 5 x (Linear + Sigmoid) on hT; weights zero-padded to 128 lanes ----
        z = h[num_layers - 1]                                           # (B, H)
        for d in range(num_dec):
            rw, rb = off[f"dec_w{d}"], off[f"dec_b{d}"]
            z = jax.nn.sigmoid(
                jnp.dot(z, p_ref[rw:rw + H, :], preferred_element_type=F32)
                + p_ref[rb:rb + 1, :])                                   # (B, 128)
            if d < num_dec - 1:
                z = z[:, 0:H]        # offset-0 lane slice; padding lanes never re-enter
        o_ref[...] = z[:, 0:Dout].astype(o_ref.dtype)

    return kernel


# --------------------------------- Wrapper -----------------------------------
def my_lstm_forward(x, slab, off, H, Dout, num_layers, num_dec):
    B, S, Din = x.shape
    kernel = _make_fused_kernel(B, S, Din, H, Dout, num_layers, num_dec, off)
    out = pl.pallas_call(
        kernel,
        out_shape=jax.ShapeDtypeStruct((B, Dout), x.dtype),
        # No grid: single invocation.  Both inputs (x view + packed parameter slab) are
        # whole-array VMEM blocks -> exactly two input DMAs.
        in_specs=[pl.BlockSpec(memory_space=pltpu.MemorySpace.VMEM),
                  pl.BlockSpec(memory_space=pltpu.MemorySpace.VMEM)],
        out_specs=pl.BlockSpec(memory_space=pltpu.MemorySpace.VMEM),
    )(x.reshape(B, S * Din), slab)
    return out[:, None, :]                                 # (B, 1, output_dim)


# ---------------------------- Pure-JAX reference ------------------------------
def ref_forward(x, params):
    mean = jnp.mean(x, axis=(1, 2), keepdims=True)
    var = jnp.mean(jnp.square(x - mean), axis=(1, 2), keepdims=True)
    xn = (x - mean) / jnp.sqrt(var + 1e-5) * params["ln_w"] + params["ln_b"]
    h_seq = jnp.transpose(xn, (1, 0, 2))
    for (wih, whh, b) in params["lstm"]:
        H = whh.shape[0]
        B = h_seq.shape[1]

        def step(carry, xt):
            h, c = carry
            gates = xt @ wih + h @ whh + b
            i_g = jax.nn.sigmoid(gates[:, :H])
            f_g = jax.nn.sigmoid(gates[:, H:2 * H])
            g_g = jnp.tanh(gates[:, 2 * H:3 * H])
            o_g = jax.nn.sigmoid(gates[:, 3 * H:4 * H])
            c = f_g * c + i_g * g_g
            h = o_g * jnp.tanh(c)
            return (h, c), h

        init = (jnp.zeros((B, H), jnp.float32), jnp.zeros((B, H), jnp.float32))
        _, h_seq = lax.scan(step, init, h_seq)
    z = h_seq[-1]
    for w, b in zip(params["dec_w"], params["dec_b"]):
        z = jax.nn.sigmoid(z @ w + b)
    return z[:, None, :]


# -------------------------------- Init ---------------------------------------
def init_params(key, input_dim, hidden_dim, output_dim, num_layers, seq_len):
    def uniform(k, shape, scale):
        return jax.random.uniform(k, shape, jnp.float32, -scale, scale)

    keys = iter(jax.random.split(key, 64))
    params = {
        "ln_w": jnp.ones((seq_len, input_dim), jnp.float32),
        "ln_b": jnp.zeros((seq_len, input_dim), jnp.float32),
        "lstm": [],
        "dec_w": [],
        "dec_b": [],
    }
    k_lstm = 1.0 / np.sqrt(hidden_dim)
    for layer in range(num_layers):
        din = input_dim if layer == 0 else hidden_dim
        wih = uniform(next(keys), (din, 4 * hidden_dim), k_lstm)
        whh = uniform(next(keys), (hidden_dim, 4 * hidden_dim), k_lstm)
        b = uniform(next(keys), (4 * hidden_dim,), k_lstm)   # b_ih + b_hh equivalent
        params["lstm"].append((wih, whh, b))
    dims = [hidden_dim, hidden_dim, hidden_dim, hidden_dim, hidden_dim, output_dim]
    for li in range(5):
        fan_in, fan_out = dims[li], dims[li + 1]
        k_lin = 1.0 / np.sqrt(fan_in)
        params["dec_w"].append(uniform(next(keys), (fan_in, fan_out), k_lin))
        params["dec_b"].append(uniform(next(keys), (fan_out,), k_lin))
    return params


if __name__ == "__main__":
    B, S, Din, H, Dout, L = 2, 8, 8, 32, 4, 2
    key = jax.random.PRNGKey(0)
    k_param, k_x = jax.random.split(key)
    params = init_params(k_param, Din, H, Dout, L, S)
    x = jax.random.normal(k_x, (B, S, Din), jnp.float32)

    slab, off = pack_params(params, S, Din)        # host-side, once
    num_dec = len(params["dec_w"])

    out = my_lstm_forward(x, slab, off, H, Dout, L, num_dec)
    out = jax.block_until_ready(out)
    assert out.shape == (B, 1, Dout), out.shape

    ref = ref_forward(x, params)
    np.testing.assert_allclose(np.asarray(out), np.asarray(ref), rtol=1e-4, atol=1e-4)
    print("KERNEL_OK")
</pallas_src>

<mosaic_0001>
module attributes {stable_mosaic.version = 11 : i64} {
  func.func @kernel(%arg0: memref<2x64xf32, #tpu.memory_space<vmem>>, %arg1: memref<336x128xf32, #tpu.memory_space<vmem>>, %arg2: memref<2x4xf32, #tpu.memory_space<vmem>>) attributes {dimension_semantics = [], scalar_prefetch = 0 : i64, scratch_operands = 0 : i64, tpu.core_type = #tpu.core_type<tc>} {
    %c0 = arith.constant 0 : index
    %c0_0 = arith.constant 0 : index
    %0 = vector.load %arg0[%c0, %c0_0] : memref<2x64xf32, #tpu.memory_space<vmem>>, vector<2x64xf32>
    %c0_1 = arith.constant 0 : index
    %c0_2 = arith.constant 0 : index
    %1 = vector.load %arg1[%c0_1, %c0_2] : memref<336x128xf32, #tpu.memory_space<vmem>>, vector<1x64xf32>
    %c8 = arith.constant 8 : index
    %c0_3 = arith.constant 0 : index
    %2 = vector.load %arg1[%c8, %c0_3] : memref<336x128xf32, #tpu.memory_space<vmem>>, vector<1x64xf32>
    %cst = arith.constant dense<0.000000e+00> : vector<2xf32>
    %3 = vector.multi_reduction <add>, %0, %cst [1] : vector<2x64xf32> to vector<2xf32>
    %4 = vector.shape_cast %3 : vector<2xf32> to vector<2x1xf32>
    %cst_4 = arith.constant 6.400000e+01 : f32
    %5 = vector.broadcast %cst_4 : f32 to vector<2x1xf32>
    %6 = arith.divf %4, %5 : vector<2x1xf32>
    %7 = vector.broadcast %6 : vector<2x1xf32> to vector<2x64xf32>
    %8 = arith.subf %0, %7 : vector<2x64xf32>
    %9 = arith.mulf %8, %8 : vector<2x64xf32>
    %cst_5 = arith.constant dense<0.000000e+00> : vector<2xf32>
    %10 = vector.multi_reduction <add>, %9, %cst_5 [1] : vector<2x64xf32> to vector<2xf32>
    %11 = vector.shape_cast %10 : vector<2xf32> to vector<2x1xf32>
    %cst_6 = arith.constant 6.400000e+01 : f32
    %12 = vector.broadcast %cst_6 : f32 to vector<2x1xf32>
    %13 = arith.divf %11, %12 : vector<2x1xf32>
    %cst_7 = arith.constant 9.99999974E-6 : f32
    %14 = vector.broadcast %cst_7 : f32 to vector<2x1xf32>
    %15 = arith.addf %13, %14 : vector<2x1xf32>
    %16 = math.rsqrt %15 : vector<2x1xf32>
    %17 = vector.broadcast %16 : vector<2x1xf32> to vector<2x64xf32>
    %18 = arith.mulf %8, %17 : vector<2x64xf32>
    %19 = vector.broadcast %1 : vector<1x64xf32> to vector<2x64xf32>
    %20 = arith.mulf %18, %19 : vector<2x64xf32>
    %21 = vector.broadcast %2 : vector<1x64xf32> to vector<2x64xf32>
    %22 = arith.addf %20, %21 : vector<2x64xf32>
    %c16 = arith.constant 16 : index
    %c0_8 = arith.constant 0 : index
    %23 = vector.load %arg1[%c16, %c0_8] : memref<336x128xf32, #tpu.memory_space<vmem>>, vector<8x128xf32>
    %c24 = arith.constant 24 : index
    %c0_9 = arith.constant 0 : index
    %24 = vector.load %arg1[%c24, %c0_9] : memref<336x128xf32, #tpu.memory_space<vmem>>, vector<32x128xf32>
    %c56 = arith.constant 56 : index
    %c0_10 = arith.constant 0 : index
    %25 = vector.load %arg1[%c56, %c0_10] : memref<336x128xf32, #tpu.memory_space<vmem>>, vector<1x128xf32>
    %c64 = arith.constant 64 : index
    %c0_11 = arith.constant 0 : index
    %26 = vector.load %arg1[%c64, %c0_11] : memref<336x128xf32, #tpu.memory_space<vmem>>, vector<32x128xf32>
    %c96 = arith.constant 96 : index
    %c0_12 = arith.constant 0 : index
    %27 = vector.load %arg1[%c96, %c0_12] : memref<336x128xf32, #tpu.memory_space<vmem>>, vector<32x128xf32>
    %c128 = arith.constant 128 : index
    %c0_13 = arith.constant 0 : index
    %28 = vector.load %arg1[%c128, %c0_13] : memref<336x128xf32, #tpu.memory_space<vmem>>, vector<1x128xf32>
    %cst_14 = arith.constant 0.000000e+00 : f32
    %29 = vector.broadcast %cst_14 : f32 to vector<2x32xf32>
    %30 = vector.extract_strided_slice %22 {offsets = [0, 0], sizes = [2, 8], strides = [1, 1]} : vector<2x64xf32> to vector<2x8xf32>
    %cst_15 = arith.constant dense<0.000000e+00> : vector<2x128xf32>
    %31 = tpu.matmul %30, %23, %cst_15 {dimension_numbers = #tpu.dot_dimension_numbers<[1], [0], [0], [1], [0, 0, 1, 1], [], []>} : vector<2x8xf32>, vector<8x128xf32>, vector<2x128xf32> -> vector<2x128xf32>
    %32 = vector.broadcast %25 : vector<1x128xf32> to vector<2x128xf32>
    %33 = arith.addf %31, %32 : vector<2x128xf32>
    %cst_16 = arith.constant dense<0.000000e+00> : vector<2x128xf32>
    %34 = tpu.matmul %29, %24, %cst_16 {dimension_numbers = #tpu.dot_dimension_numbers<[1], [0], [0], [1], [0, 0, 1, 1], [], []>} : vector<2x32xf32>, vector<32x128xf32>, vector<2x128xf32> -> vector<2x128xf32>
    %35 = arith.addf %33, %34 : vector<2x128xf32>
    %36 = arith.negf %35 : vector<2x128xf32>
    %37 = math.exp %36 : vector<2x128xf32>
    %cst_17 = arith.constant 1.000000e+00 : f32
    %38 = vector.broadcast %cst_17 : f32 to vector<2x128xf32>
    %39 = arith.addf %38, %37 : vector<2x128xf32>
    %40 = arith.divf %38, %39 : vector<2x128xf32>
    %41 = math.tanh %35 : vector<2x128xf32>
    %42 = vector.extract_strided_slice %40 {offsets = [0, 32], sizes = [2, 32], strides = [1, 1]} : vector<2x128xf32> to vector<2x32xf32>
    %43 = arith.mulf %42, %29 : vector<2x32xf32>
    %44 = vector.extract_strided_slice %40 {offsets = [0, 0], sizes = [2, 32], strides = [1, 1]} : vector<2x128xf32> to vector<2x32xf32>
    %45 = vector.extract_strided_slice %41 {offsets = [0, 64], sizes = [2, 32], strides = [1, 1]} : vector<2x128xf32> to vector<2x32xf32>
    %46 = arith.mulf %44, %45 : vector<2x32xf32>
    %47 = arith.addf %43, %46 : vector<2x32xf32>
    %48 = vector.extract_strided_slice %40 {offsets = [0, 96], sizes = [2, 32], strides = [1, 1]} : vector<2x128xf32> to vector<2x32xf32>
    %49 = math.tanh %47 : vector<2x32xf32>
    %50 = arith.mulf %48, %49 : vector<2x32xf32>
    %51 = vector.extract_strided_slice %22 {offsets = [0, 8], sizes = [2, 8], strides = [1, 1]} : vector<2x64xf32> to vector<2x8xf32>
    %cst_18 = arith.constant dense<0.000000e+00> : vector<2x128xf32>
    %52 = tpu.matmul %51, %23, %cst_18 {dimension_numbers = #tpu.dot_dimension_numbers<[1], [0], [0], [1], [0, 0, 1, 1], [], []>} : vector<2x8xf32>, vector<8x128xf32>, vector<2x128xf32> -> vector<2x128xf32>
    %53 = vector.broadcast %25 : vector<1x128xf32> to vector<2x128xf32>
    %54 = arith.addf %52, %53 : vector<2x128xf32>
    %cst_19 = arith.constant dense<0.000000e+00> : vector<2x128xf32>
    %55 = tpu.matmul %50, %24, %cst_19 {dimension_numbers = #tpu.dot_dimension_numbers<[1], [0], [0], [1], [0, 0, 1, 1], [], []>} : vector<2x32xf32>, vector<32x128xf32>, vector<2x128xf32> -> vector<2x128xf32>
    %56 = arith.addf %54, %55 : vector<2x128xf32>
    %57 = arith.negf %56 : vector<2x128xf32>
    %58 = math.exp %57 : vector<2x128xf32>
    %cst_20 = arith.constant 1.000000e+00 : f32
    %59 = vector.broadcast %cst_20 : f32 to vector<2x128xf32>
    %60 = arith.addf %59, %58 : vector<2x128xf32>
    %61 = arith.divf %59, %60 : vector<2x128xf32>
    %62 = math.tanh %56 : vector<2x128xf32>
    %63 = vector.extract_strided_slice %61 {offsets = [0, 32], sizes = [2, 32], strides = [1, 1]} : vector<2x128xf32> to vector<2x32xf32>
    %64 = arith.mulf %63, %47 : vector<2x32xf32>
    %65 = vector.extract_strided_slice %61 {offsets = [0, 0], sizes = [2, 32], strides = [1, 1]} : vector<2x128xf32> to vector<2x32xf32>
    %66 = vector.extract_strided_slice %62 {offsets = [0, 64], sizes = [2, 32], strides = [1, 1]} : vector<2x128xf32> to vector<2x32xf32>
    %67 = arith.mulf %65, %66 : vector<2x32xf32>
    %68 = arith.addf %64, %67 : vector<2x32xf32>
    %69 = vector.extract_strided_slice %61 {offsets = [0, 96], sizes = [2, 32], strides = [1, 1]} : vector<2x128xf32> to vector<2x32xf32>
    %70 = math.tanh %68 : vector<2x32xf32>
    %71 = arith.mulf %69, %70 : vector<2x32xf32>
    %cst_21 = arith.constant dense<0.000000e+00> : vector<2x128xf32>
    %72 = tpu.matmul %50, %26, %cst_21 {dimension_numbers = #tpu.dot_dimension_numbers<[1], [0], [0], [1], [0, 0, 1, 1], [], []>} : vector<2x32xf32>, vector<32x128xf32>, vector<2x128xf32> -> vector<2x128xf32>
    %73 = vector.broadcast %28 : vector<1x128xf32> to vector<2x128xf32>
    %74 = arith.addf %72, %73 : vector<2x128xf32>
    %cst_22 = arith.constant dense<0.000000e+00> : vector<2x128xf32>
    %75 = tpu.matmul %29, %27, %cst_22 {dimension_numbers = #tpu.dot_dimension_numbers<[1], [0], [0], [1], [0, 0, 1, 1], [], []>} : vector<2x32xf32>, vector<32x128xf32>, vector<2x128xf32> -> vector<2x128xf32>
    %76 = arith.addf %74, %75 : vector<2x128xf32>
    %77 = arith.negf %76 : vector<2x128xf32>
    %78 = math.exp %77 : vector<2x128xf32>
    %cst_23 = arith.constant 1.000000e+00 : f32
    %79 = vector.broadcast %cst_23 : f32 to vector<2x128xf32>
    %80 = arith.addf %79, %78 : vector<2x128xf32>
    %81 = arith.divf %79, %80 : vector<2x128xf32>
    %82 = math.tanh %76 : vector<2x128xf32>
    %83 = vector.extract_strided_slice %81 {offsets = [0, 32], sizes = [2, 32], strides = [1, 1]} : vector<2x128xf32> to vector<2x32xf32>
    %84 = arith.mulf %83, %29 : vector<2x32xf32>
    %85 = vector.extract_strided_slice %81 {offsets = [0, 0], sizes = [2, 32], strides = [1, 1]} : vector<2x128xf32> to vector<2x32xf32>
    %86 = vector.extract_strided_slice %82 {offsets = [0, 64], sizes = [2, 32], strides = [1, 1]} : vector<2x128xf32> to vector<2x32xf32>
    %87 = arith.mulf %85, %86 : vector<2x32xf32>
    %88 = arith.addf %84, %87 : vector<2x32xf32>
    %89 = vector.extract_strided_slice %81 {offsets = [0, 96], sizes = [2, 32], strides = [1, 1]} : vector<2x128xf32> to vector<2x32xf32>
    %90 = math.tanh %88 : vector<2x32xf32>
    %91 = arith.mulf %89, %90 : vector<2x32xf32>
    %92 = vector.extract_strided_slice %22 {offsets = [0, 16], sizes = [2, 8], strides = [1, 1]} : vector<2x64xf32> to vector<2x8xf32>
    %cst_24 = arith.constant dense<0.000000e+00> : vector<2x128xf32>
    %93 = tpu.matmul %92, %23, %cst_24 {dimension_numbers = #tpu.dot_dimension_numbers<[1], [0], [0], [1], [0, 0, 1, 1], [], []>} : vector<2x8xf32>, vector<8x128xf32>, vector<2x128xf32> -> vector<2x128xf32>
    %94 = vector.broadcast %25 : vector<1x128xf32> to vector<2x128xf32>
    %95 = arith.addf %93, %94 : vector<2x128xf32>
    %cst_25 = arith.constant dense<0.000000e+00> : vector<2x128xf32>
    %96 = tpu.matmul %71, %24, %cst_25 {dimension_numbers = #tpu.dot_dimension_numbers<[1], [0], [0], [1], [0, 0, 1, 1], [], []>} : vector<2x32xf32>, vector<32x128xf32>, vector<2x128xf32> -> vector<2x128xf32>
    %97 = arith.addf %95, %96 : vector<2x128xf32>
    %98 = arith.negf %97 : vector<2x128xf32>
    %99 = math.exp %98 : vector<2x128xf32>
    %cst_26 = arith.constant 1.000000e+00 : f32
    %100 = vector.broadcast %cst_26 : f32 to vector<2x128xf32>
    %101 = arith.addf %100, %99 : vector<2x128xf32>
    %102 = arith.divf %100, %101 : vector<2x128xf32>
    %103 = math.tanh %97 : vector<2x128xf32>
    %104 = vector.extract_strided_slice %102 {offsets = [0, 32], sizes = [2, 32], strides = [1, 1]} : vector<2x128xf32> to vector<2x32xf32>
    %105 = arith.mulf %104, %68 : vector<2x32xf32>
    %106 = vector.extract_strided_slice %102 {offsets = [0, 0], sizes = [2, 32], strides = [1, 1]} : vector<2x128xf32> to vector<2x32xf32>
    %107 = vector.extract_strided_slice %103 {offsets = [0, 64], sizes = [2, 32], strides = [1, 1]} : vector<2x128xf32> to vector<2x32xf32>
    %108 = arith.mulf %106, %107 : vector<2x32xf32>
    %109 = arith.addf %105, %108 : vector<2x32xf32>
    %110 = vector.extract_strided_slice %102 {offsets = [0, 96], sizes = [2, 32], strides = [1, 1]} : vector<2x128xf32> to vector<2x32xf32>
    %111 = math.tanh %109 : vector<2x32xf32>
    %112 = arith.mulf %110, %111 : vector<2x32xf32>
    %cst_27 = arith.constant dense<0.000000e+00> : vector<2x128xf32>
    %113 = tpu.matmul %71, %26, %cst_27 {dimension_numbers = #tpu.dot_dimension_numbers<[1], [0], [0], [1], [0, 0, 1, 1], [], []>} : vector<2x32xf32>, vector<32x128xf32>, vector<2x128xf32> -> vector<2x128xf32>
    %114 = vector.broadcast %28 : vector<1x128xf32> to vector<2x128xf32>
    %115 = arith.addf %113, %114 : vector<2x128xf32>
    %cst_28 = arith.constant dense<0.000000e+00> : vector<2x128xf32>
    %116 = tpu.matmul %91, %27, %cst_28 {dimension_numbers = #tpu.dot_dimension_numbers<[1], [0], [0], [1], [0, 0, 1, 1], [], []>} : vector<2x32xf32>, vector<32x128xf32>, vector<2x128xf32> -> vector<2x128xf32>
    %117 = arith.addf %115, %116 : vector<2x128xf32>
    %118 = arith.negf %117 : vector<2x128xf32>
    %119 = math.exp %118 : vector<2x128xf32>
    %cst_29 = arith.constant 1.000000e+00 : f32
    %120 = vector.broadcast %cst_29 : f32 to vector<2x128xf32>
    %121 = arith.addf %120, %119 : vector<2x128xf32>
    %122 = arith.divf %120, %121 : vector<2x128xf32>
    %123 = math.tanh %117 : vector<2x128xf32>
    %124 = vector.extract_strided_slice %122 {offsets = [0, 32], sizes = [2, 32], strides = [1, 1]} : vector<2x128xf32> to vector<2x32xf32>
    %125 = arith.mulf %124, %88 : vector<2x32xf32>
    %126 = vector.extract_strided_slice %122 {offsets = [0, 0], sizes = [2, 32], strides = [1, 1]} : vector<2x128xf32> to vector<2x32xf32>
    %127 = vector.extract_strided_slice %123 {offsets = [0, 64], sizes = [2, 32], strides = [1, 1]} : vector<2x128xf32> to vector<2x32xf32>
    %128 = arith.mulf %126, %127 : vector<2x32xf32>
    %129 = arith.addf %125, %128 : vector<2x32xf32>
    %130 = vector.extract_strided_slice %122 {offsets = [0, 96], sizes = [2, 32], strides = [1, 1]} : vector<2x128xf32> to vector<2x32xf32>
    %131 = math.tanh %129 : vector<2x32xf32>
    %132 = arith.mulf %130, %131 : vector<2x32xf32>
    %133 = vector.extract_strided_slice %22 {offsets = [0, 24], sizes = [2, 8], strides = [1, 1]} : vector<2x64xf32> to vector<2x8xf32>
    %cst_30 = arith.constant dense<0.000000e+00> : vector<2x128xf32>
    %134 = tpu.matmul %133, %23, %cst_30 {dimension_numbers = #tpu.dot_dimension_numbers<[1], [0], [0], [1], [0, 0, 1, 1], [], []>} : vector<2x8xf32>, vector<8x128xf32>, vector<2x128xf32> -> vector<2x128xf32>
    %135 = vector.broadcast %25 : vector<1x128xf32> to vector<2x128xf32>
    %136 = arith.addf %134, %135 : vector<2x128xf32>
    %cst_31 = arith.constant dense<0.000000e+00> : vector<2x128xf32>
    %137 = tpu.matmul %112, %24, %cst_31 {dimension_numbers = #tpu.dot_dimension_numbers<[1], [0], [0], [1], [0, 0, 1, 1], [], []>} : vector<2x32xf32>, vector<32x128xf32>, vector<2x128xf32> -> vector<2x128xf32>
    %138 = arith.addf %136, %137 : vector<2x128xf32>
    %139 = arith.negf %138 : vector<2x128xf32>
    %140 = math.exp %139 : vector<2x128xf32>
    %cst_32 = arith.constant 1.000000e+00 : f32
    %141 = vector.broadcast %cst_32 : f32 to vector<2x128xf32>
    %142 = arith.addf %141, %140 : vector<2x128xf32>
    %143 = arith.divf %141, %142 : vector<2x128xf32>
    %144 = math.tanh %138 : vector<2x128xf32>
    %145 = vector.extract_strided_slice %143 {offsets = [0, 32], sizes = [2, 32], strides = [1, 1]} : vector<2x128xf32> to vector<2x32xf32>
    %146 = arith.mulf %145, %109 : vector<2x32xf32>
    %147 = vector.extract_strided_slice %143 {offsets = [0, 0], sizes = [2, 32], strides = [1, 1]} : vector<2x128xf32> to vector<2x32xf32>
    %148 = vector.extract_strided_slice %144 {offsets = [0, 64], sizes = [2, 32], strides = [1, 1]} : vector<2x128xf32> to vector<2x32xf32>
    %149 = arith.mulf %147, %148 : vector<2x32xf32>
    %150 = arith.addf %146, %149 : vector<2x32xf32>
    %151 = vector.extract_strided_slice %143 {offsets = [0, 96], sizes = [2, 32], strides = [1, 1]} : vector<2x128xf32> to vector<2x32xf32>
    %152 = math.tanh %150 : vector<2x32xf32>
    %153 = arith.mulf %151, %152 : vector<2x32xf32>
    %cst_33 = arith.constant dense<0.000000e+00> : vector<2x128xf32>
    %154 = tpu.matmul %112, %26, %cst_33 {dimension_numbers = #tpu.dot_dimension_numbers<[1], [0], [0], [1], [0, 0, 1, 1], [], []>} : vector<2x32xf32>, vector<32x128xf32>, vector<2x128xf32> -> vector<2x128xf32>
    %155 = vector.broadcast %28 : vector<1x128xf32> to vector<2x128xf32>
    %156 = arith.addf %154, %155 : vector<2x128xf32>
    %cst_34 = arith.constant dense<0.000000e+00> : vector<2x128xf32>
    %157 = tpu.matmul %132, %27, %cst_34 {dimension_numbers = #tpu.dot_dimension_numbers<[1], [0], [0], [1], [0, 0, 1, 1], [], []>} : vector<2x32xf32>, vector<32x128xf32>, vector<2x128xf32> -> vector<2x128xf32>
    %158 = arith.addf %156, %157 : vector<2x128xf32>
    %159 = arith.negf %158 : vector<2x128xf32>
    %160 = math.exp %159 : vector<2x128xf32>
    %cst_35 = arith.constant 1.000000e+00 : f32
    %161 = vector.broadcast %cst_35 : f32 to vector<2x128xf32>
    %162 = arith.addf %161, %160 : vector<2x128xf32>
    %163 = arith.divf %161, %162 : vector<2x128xf32>
    %164 = math.tanh %158 : vector<2x128xf32>
    %165 = vector.extract_strided_slice %163 {offsets = [0, 32], sizes = [2, 32], strides = [1, 1]} : vector<2x128xf32> to vector<2x32xf32>
    %166 = arith.mulf %165, %129 : vector<2x32xf32>
    %167 = vector.extract_strided_slice %163 {offsets = [0, 0], sizes = [2, 32], strides = [1, 1]} : vector<2x128xf32> to vector<2x32xf32>
    %168 = vector.extract_strided_slice %164 {offsets = [0, 64], sizes = [2, 32], strides = [1, 1]} : vector<2x128xf32> to vector<2x32xf32>
    %169 = arith.mulf %167, %168 : vector<2x32xf32>
    %170 = arith.addf %166, %169 : vector<2x32xf32>
    %171 = vector.extract_strided_slice %163 {offsets = [0, 96], sizes = [2, 32], strides = [1, 1]} : vector<2x128xf32> to vector<2x32xf32>
    %172 = math.tanh %170 : vector<2x32xf32>
    %173 = arith.mulf %171, %172 : vector<2x32xf32>
    %174 = vector.extract_strided_slice %22 {offsets = [0, 32], sizes = [2, 8], strides = [1, 1]} : vector<2x64xf32> to vector<2x8xf32>
    %cst_36 = arith.constant dense<0.000000e+00> : vector<2x128xf32>
    %175 = tpu.matmul %174, %23, %cst_36 {dimension_numbers = #tpu.dot_dimension_numbers<[1], [0], [0], [1], [0, 0, 1, 1], [], []>} : vector<2x8xf32>, vector<8x128xf32>, vector<2x128xf32> -> vector<2x128xf32>
    %176 = vector.broadcast %25 : vector<1x128xf32> to vector<2x128xf32>
    %177 = arith.addf %175, %176 : vector<2x128xf32>
    %cst_37 = arith.constant dense<0.000000e+00> : vector<2x128xf32>
    %178 = tpu.matmul %153, %24, %cst_37 {dimension_numbers = #tpu.dot_dimension_numbers<[1], [0], [0], [1], [0, 0, 1, 1], [], []>} : vector<2x32xf32>, vector<32x128xf32>, vector<2x128xf32> -> vector<2x128xf32>
    %179 = arith.addf %177, %178 : vector<2x128xf32>
    %180 = arith.negf %179 : vector<2x128xf32>
    %181 = math.exp %180 : vector<2x128xf32>
    %cst_38 = arith.constant 1.000000e+00 : f32
    %182 = vector.broadcast %cst_38 : f32 to vector<2x128xf32>
    %183 = arith.addf %182, %181 : vector<2x128xf32>
    %184 = arith.divf %182, %183 : vector<2x128xf32>
    %185 = math.tanh %179 : vector<2x128xf32>
    %186 = vector.extract_strided_slice %184 {offsets = [0, 32], sizes = [2, 32], strides = [1, 1]} : vector<2x128xf32> to vector<2x32xf32>
    %187 = arith.mulf %186, %150 : vector<2x32xf32>
    %188 = vector.extract_strided_slice %184 {offsets = [0, 0], sizes = [2, 32], strides = [1, 1]} : vector<2x128xf32> to vector<2x32xf32>
    %189 = vector.extract_strided_slice %185 {offsets = [0, 64], sizes = [2, 32], strides = [1, 1]} : vector<2x128xf32> to vector<2x32xf32>
    %190 = arith.mulf %188, %189 : vector<2x32xf32>
    %191 = arith.addf %187, %190 : vector<2x32xf32>
    %192 = vector.extract_strided_slice %184 {offsets = [0, 96], sizes = [2, 32], strides = [1, 1]} : vector<2x128xf32> to vector<2x32xf32>
    %193 = math.tanh %191 : vector<2x32xf32>
    %194 = arith.mulf %192, %193 : vector<2x32xf32>
    %cst_39 = arith.constant dense<0.000000e+00> : vector<2x128xf32>
    %195 = tpu.matmul %153, %26, %cst_39 {dimension_numbers = #tpu.dot_dimension_numbers<[1], [0], [0], [1], [0, 0, 1, 1], [], []>} : vector<2x32xf32>, vector<32x128xf32>, vector<2x128xf32> -> vector<2x128xf32>
    %196 = vector.broadcast %28 : vector<1x128xf32> to vector<2x128xf32>
    %197 = arith.addf %195, %196 : vector<2x128xf32>
    %cst_40 = arith.constant dense<0.000000e+00> : vector<2x128xf32>
    %198 = tpu.matmul %173, %27, %cst_40 {dimension_numbers = #tpu.dot_dimension_numbers<[1], [0], [0], [1], [0, 0, 1, 1], [], []>} : vector<2x32xf32>, vector<32x128xf32>, vector<2x128xf32> -> vector<2x128xf32>
    %199 = arith.addf %197, %198 : vector<2x128xf32>
    %200 = arith.negf %199 : vector<2x128xf32>
    %201 = math.exp %200 : vector<2x128xf32>
    %cst_41 = arith.constant 1.000000e+00 : f32
    %202 = vector.broadcast %cst_41 : f32 to vector<2x128xf32>
    %203 = arith.addf %202, %201 : vector<2x128xf32>
    %204 = arith.divf %202, %203 : vector<2x128xf32>
    %205 = math.tanh %199 : vector<2x128xf32>
    %206 = vector.extract_strided_slice %204 {offsets = [0, 32], sizes = [2, 32], strides = [1, 1]} : vector<2x128xf32> to vector<2x32xf32>
    %207 = arith.mulf %206, %170 : vector<2x32xf32>
    %208 = vector.extract_strided_slice %204 {offsets = [0, 0], sizes = [2, 32], strides = [1, 1]} : vector<2x128xf32> to vector<2x32xf32>
    %209 = vector.extract_strided_slice %205 {offsets = [0, 64], sizes = [2, 32], strides = [1, 1]} : vector<2x128xf32> to vector<2x32xf32>
    %210 = arith.mulf %208, %209 : vector<2x32xf32>
    %211 = arith.addf %207, %210 : vector<2x32xf32>
    %212 = vector.extract_strided_slice %204 {offsets = [0, 96], sizes = [2, 32], strides = [1, 1]} : vector<2x128xf32> to vector<2x32xf32>
    %213 = math.tanh %211 : vector<2x32xf32>
    %214 = arith.mulf %212, %213 : vector<2x32xf32>
    %215 = vector.extract_strided_slice %22 {offsets = [0, 40], sizes = [2, 8], strides = [1, 1]} : vector<2x64xf32> to vector<2x8xf32>
    %cst_42 = arith.constant dense<0.000000e+00> : vector<2x128xf32>
    %216 = tpu.matmul %215, %23, %cst_42 {dimension_numbers = #tpu.dot_dimension_numbers<[1], [0], [0], [1], [0, 0, 1, 1], [], []>} : vector<2x8xf32>, vector<8x128xf32>, vector<2x128xf32> -> vector<2x128xf32>
    %217 = vector.broadcast %25 : vector<1x128xf32> to vector<2x128xf32>
    %218 = arith.addf %216, %217 : vector<2x128xf32>
    %cst_43 = arith.constant dense<0.000000e+00> : vector<2x128xf32>
    %219 = tpu.matmul %194, %24, %cst_43 {dimension_numbers = #tpu.dot_dimension_numbers<[1], [0], [0], [1], [0, 0, 1, 1], [], []>} : vector<2x32xf32>, vector<32x128xf32>, vector<2x128xf32> -> vector<2x128xf32>
    %220 = arith.addf %218, %219 : vector<2x128xf32>
    %221 = arith.negf %220 : vector<2x128xf32>
    %222 = math.exp %221 : vector<2x128xf32>
    %cst_44 = arith.constant 1.000000e+00 : f32
    %223 = vector.broadcast %cst_44 : f32 to vector<2x128xf32>
    %224 = arith.addf %223, %222 : vector<2x128xf32>
    %225 = arith.divf %223, %224 : vector<2x128xf32>
    %226 = math.tanh %220 : vector<2x128xf32>
    %227 = vector.extract_strided_slice %225 {offsets = [0, 32], sizes = [2, 32], strides = [1, 1]} : vector<2x128xf32> to vector<2x32xf32>
    %228 = arith.mulf %227, %191 : vector<2x32xf32>
    %229 = vector.extract_strided_slice %225 {offsets = [0, 0], sizes = [2, 32], strides = [1, 1]} : vector<2x128xf32> to vector<2x32xf32>
    %230 = vector.extract_strided_slice %226 {offsets = [0, 64], sizes = [2, 32], strides = [1, 1]} : vector<2x128xf32> to vector<2x32xf32>
    %231 = arith.mulf %229, %230 : vector<2x32xf32>
    %232 = arith.addf %228, %231 : vector<2x32xf32>
    %233 = vector.extract_strided_slice %225 {offsets = [0, 96], sizes = [2, 32], strides = [1, 1]} : vector<2x128xf32> to vector<2x32xf32>
    %234 = math.tanh %232 : vector<2x32xf32>
    %235 = arith.mulf %233, %234 : vector<2x32xf32>
    %cst_45 = arith.constant dense<0.000000e+00> : vector<2x128xf32>
    %236 = tpu.matmul %194, %26, %cst_45 {dimension_numbers = #tpu.dot_dimension_numbers<[1], [0], [0], [1], [0, 0, 1, 1], [], []>} : vector<2x32xf32>, vector<32x128xf32>, vector<2x128xf32> -> vector<2x128xf32>
    %237 = vector.broadcast %28 : vector<1x128xf32> to vector<2x128xf32>
    %238 = arith.addf %236, %237 : vector<2x128xf32>
    %cst_46 = arith.constant dense<0.000000e+00> : vector<2x128xf32>
    %239 = tpu.matmul %214, %27, %cst_46 {dimension_numbers = #tpu.dot_dimension_numbers<[1], [0], [0], [1], [0, 0, 1, 1], [], []>} : vector<2x32xf32>, vector<32x128xf32>, vector<2x128xf32> -> vector<2x128xf32>
    %240 = arith.addf %238, %239 : vector<2x128xf32>
    %241 = arith.negf %240 : vector<2x128xf32>
    %242 = math.exp %241 : vector<2x128xf32>
    %cst_47 = arith.constant 1.000000e+00 : f32
    %243 = vector.broadcast %cst_47 : f32 to vector<2x128xf32>
    %244 = arith.addf %243, %242 : vector<2x128xf32>
    %245 = arith.divf %243, %244 : vector<2x128xf32>
    %246 = math.tanh %240 : vector<2x128xf32>
    %247 = vector.extract_strided_slice %245 {offsets = [0, 32], sizes = [2, 32], strides = [1, 1]} : vector<2x128xf32> to vector<2x32xf32>
    %248 = arith.mulf %247, %211 : vector<2x32xf32>
    %249 = vector.extract_strided_slice %245 {offsets = [0, 0], sizes = [2, 32], strides = [1, 1]} : vector<2x128xf32> to vector<2x32xf32>
    %250 = vector.extract_strided_slice %246 {offsets = [0, 64], sizes = [2, 32], strides = [1, 1]} : vector<2x128xf32> to vector<2x32xf32>
    %251 = arith.mulf %249, %250 : vector<2x32xf32>
    %252 = arith.addf %248, %251 : vector<2x32xf32>
    %253 = vector.extract_strided_slice %245 {offsets = [0, 96], sizes = [2, 32], strides = [1, 1]} : vector<2x128xf32> to vector<2x32xf32>
    %254 = math.tanh %252 : vector<2x32xf32>
    %255 = arith.mulf %253, %254 : vector<2x32xf32>
    %256 = vector.extract_strided_slice %22 {offsets = [0, 48], sizes = [2, 8], strides = [1, 1]} : vector<2x64xf32> to vector<2x8xf32>
    %cst_48 = arith.constant dense<0.000000e+00> : vector<2x128xf32>
    %257 = tpu.matmul %256, %23, %cst_48 {dimension_numbers = #tpu.dot_dimension_numbers<[1], [0], [0], [1], [0, 0, 1, 1], [], []>} : vector<2x8xf32>, vector<8x128xf32>, vector<2x128xf32> -> vector<2x128xf32>
    %258 = vector.broadcast %25 : vector<1x128xf32> to vector<2x128xf32>
    %259 = arith.addf %257, %258 : vector<2x128xf32>
    %cst_49 = arith.constant dense<0.000000e+00> : vector<2x128xf32>
    %260 = tpu.matmul %235, %24, %cst_49 {dimension_numbers = #tpu.dot_dimension_numbers<[1], [0], [0], [1], [0, 0, 1, 1], [], []>} : vector<2x32xf32>, vector<32x128xf32>, vector<2x128xf32> -> vector<2x128xf32>
    %261 = arith.addf %259, %260 : vector<2x128xf32>
    %262 = arith.negf %261 : vector<2x128xf32>
    %263 = math.exp %262 : vector<2x128xf32>
    %cst_50 = arith.constant 1.000000e+00 : f32
    %264 = vector.broadcast %cst_50 : f32 to vector<2x128xf32>
    %265 = arith.addf %264, %263 : vector<2x128xf32>
    %266 = arith.divf %264, %265 : vector<2x128xf32>
    %267 = math.tanh %261 : vector<2x128xf32>
    %268 = vector.extract_strided_slice %266 {offsets = [0, 32], sizes = [2, 32], strides = [1, 1]} : vector<2x128xf32> to vector<2x32xf32>
    %269 = arith.mulf %268, %232 : vector<2x32xf32>
    %270 = vector.extract_strided_slice %266 {offsets = [0, 0], sizes = [2, 32], strides = [1, 1]} : vector<2x128xf32> to vector<2x32xf32>
    %271 = vector.extract_strided_slice %267 {offsets = [0, 64], sizes = [2, 32], strides = [1, 1]} : vector<2x128xf32> to vector<2x32xf32>
    %272 = arith.mulf %270, %271 : vector<2x32xf32>
    %273 = arith.addf %269, %272 : vector<2x32xf32>
    %274 = vector.extract_strided_slice %266 {offsets = [0, 96], sizes = [2, 32], strides = [1, 1]} : vector<2x128xf32> to vector<2x32xf32>
    %275 = math.tanh %273 : vector<2x32xf32>
    %276 = arith.mulf %274, %275 : vector<2x32xf32>
    %cst_51 = arith.constant dense<0.000000e+00> : vector<2x128xf32>
    %277 = tpu.matmul %235, %26, %cst_51 {dimension_numbers = #tpu.dot_dimension_numbers<[1], [0], [0], [1], [0, 0, 1, 1], [], []>} : vector<2x32xf32>, vector<32x128xf32>, vector<2x128xf32> -> vector<2x128xf32>
    %278 = vector.broadcast %28 : vector<1x128xf32> to vector<2x128xf32>
    %279 = arith.addf %277, %278 : vector<2x128xf32>
    %cst_52 = arith.constant dense<0.000000e+00> : vector<2x128xf32>
    %280 = tpu.matmul %255, %27, %cst_52 {dimension_numbers = #tpu.dot_dimension_numbers<[1], [0], [0], [1], [0, 0, 1, 1], [], []>} : vector<2x32xf32>, vector<32x128xf32>, vector<2x128xf32> -> vector<2x128xf32>
    %281 = arith.addf %279, %280 : vector<2x128xf32>
    %282 = arith.negf %281 : vector<2x128xf32>
    %283 = math.exp %282 : vector<2x128xf32>
    %cst_53 = arith.constant 1.000000e+00 : f32
    %284 = vector.broadcast %cst_53 : f32 to vector<2x128xf32>
    %285 = arith.addf %284, %283 : vector<2x128xf32>
    %286 = arith.divf %284, %285 : vector<2x128xf32>
    %287 = math.tanh %281 : vector<2x128xf32>
    %288 = vector.extract_strided_slice %286 {offsets = [0, 32], sizes = [2, 32], strides = [1, 1]} : vector<2x128xf32> to vector<2x32xf32>
    %289 = arith.mulf %288, %252 : vector<2x32xf32>
    %290 = vector.extract_strided_slice %286 {offsets = [0, 0], sizes = [2, 32], strides = [1, 1]} : vector<2x128xf32> to vector<2x32xf32>
    %291 = vector.extract_strided_slice %287 {offsets = [0, 64], sizes = [2, 32], strides = [1, 1]} : vector<2x128xf32> to vector<2x32xf32>
    %292 = arith.mulf %290, %291 : vector<2x32xf32>
    %293 = arith.addf %289, %292 : vector<2x32xf32>
    %294 = vector.extract_strided_slice %286 {offsets = [0, 96], sizes = [2, 32], strides = [1, 1]} : vector<2x128xf32> to vector<2x32xf32>
    %295 = math.tanh %293 : vector<2x32xf32>
    %296 = arith.mulf %294, %295 : vector<2x32xf32>
    %297 = vector.extract_strided_slice %22 {offsets = [0, 56], sizes = [2, 8], strides = [1, 1]} : vector<2x64xf32> to vector<2x8xf32>
    %cst_54 = arith.constant dense<0.000000e+00> : vector<2x128xf32>
    %298 = tpu.matmul %297, %23, %cst_54 {dimension_numbers = #tpu.dot_dimension_numbers<[1], [0], [0], [1], [0, 0, 1, 1], [], []>} : vector<2x8xf32>, vector<8x128xf32>, vector<2x128xf32> -> vector<2x128xf32>
    %299 = vector.broadcast %25 : vector<1x128xf32> to vector<2x128xf32>
    %300 = arith.addf %298, %299 : vector<2x128xf32>
    %cst_55 = arith.constant dense<0.000000e+00> : vector<2x128xf32>
    %301 = tpu.matmul %276, %24, %cst_55 {dimension_numbers = #tpu.dot_dimension_numbers<[1], [0], [0], [1], [0, 0, 1, 1], [], []>} : vector<2x32xf32>, vector<32x128xf32>, vector<2x128xf32> -> vector<2x128xf32>
    %302 = arith.addf %300, %301 : vector<2x128xf32>
    %303 = arith.negf %302 : vector<2x128xf32>
    %304 = math.exp %303 : vector<2x128xf32>
    %cst_56 = arith.constant 1.000000e+00 : f32
    %305 = vector.broadcast %cst_56 : f32 to vector<2x128xf32>
    %306 = arith.addf %305, %304 : vector<2x128xf32>
    %307 = arith.divf %305, %306 : vector<2x128xf32>
    %308 = math.tanh %302 : vector<2x128xf32>
    %309 = vector.extract_strided_slice %307 {offsets = [0, 32], sizes = [2, 32], strides = [1, 1]} : vector<2x128xf32> to vector<2x32xf32>
    %310 = arith.mulf %309, %273 : vector<2x32xf32>
    %311 = vector.extract_strided_slice %307 {offsets = [0, 0], sizes = [2, 32], strides = [1, 1]} : vector<2x128xf32> to vector<2x32xf32>
    %312 = vector.extract_strided_slice %308 {offsets = [0, 64], sizes = [2, 32], strides = [1, 1]} : vector<2x128xf32> to vector<2x32xf32>
    %313 = arith.mulf %311, %312 : vector<2x32xf32>
    %314 = arith.addf %310, %313 : vector<2x32xf32>
    %315 = vector.extract_strided_slice %307 {offsets = [0, 96], sizes = [2, 32], strides = [1, 1]} : vector<2x128xf32> to vector<2x32xf32>
    %316 = math.tanh %314 : vector<2x32xf32>
    %317 = arith.mulf %315, %316 : vector<2x32xf32>
    %cst_57 = arith.constant dense<0.000000e+00> : vector<2x128xf32>
    %318 = tpu.matmul %276, %26, %cst_57 {dimension_numbers = #tpu.dot_dimension_numbers<[1], [0], [0], [1], [0, 0, 1, 1], [], []>} : vector<2x32xf32>, vector<32x128xf32>, vector<2x128xf32> -> vector<2x128xf32>
    %319 = vector.broadcast %28 : vector<1x128xf32> to vector<2x128xf32>
    %320 = arith.addf %318, %319 : vector<2x128xf32>
    %cst_58 = arith.constant dense<0.000000e+00> : vector<2x128xf32>
    %321 = tpu.matmul %296, %27, %cst_58 {dimension_numbers = #tpu.dot_dimension_numbers<[1], [0], [0], [1], [0, 0, 1, 1], [], []>} : vector<2x32xf32>, vector<32x128xf32>, vector<2x128xf32> -> vector<2x128xf32>
    %322 = arith.addf %320, %321 : vector<2x128xf32>
    %323 = arith.negf %322 : vector<2x128xf32>
    %324 = math.exp %323 : vector<2x128xf32>
    %cst_59 = arith.constant 1.000000e+00 : f32
    %325 = vector.broadcast %cst_59 : f32 to vector<2x128xf32>
    %326 = arith.addf %325, %324 : vector<2x128xf32>
    %327 = arith.divf %325, %326 : vector<2x128xf32>
    %328 = math.tanh %322 : vector<2x128xf32>
    %329 = vector.extract_strided_slice %327 {offsets = [0, 32], sizes = [2, 32], strides = [1, 1]} : vector<2x128xf32> to vector<2x32xf32>
    %330 = arith.mulf %329, %293 : vector<2x32xf32>
    %331 = vector.extract_strided_slice %327 {offsets = [0, 0], sizes = [2, 32], strides = [1, 1]} : vector<2x128xf32> to vector<2x32xf32>
    %332 = vector.extract_strided_slice %328 {offsets = [0, 64], sizes = [2, 32], strides = [1, 1]} : vector<2x128xf32> to vector<2x32xf32>
    %333 = arith.mulf %331, %332 : vector<2x32xf32>
    %334 = arith.addf %330, %333 : vector<2x32xf32>
    %335 = vector.extract_strided_slice %327 {offsets = [0, 96], sizes = [2, 32], strides = [1, 1]} : vector<2x128xf32> to vector<2x32xf32>
    %336 = math.tanh %334 : vector<2x32xf32>
    %337 = arith.mulf %335, %336 : vector<2x32xf32>
    %cst_60 = arith.constant dense<0.000000e+00> : vector<2x128xf32>
    %338 = tpu.matmul %317, %26, %cst_60 {dimension_numbers = #tpu.dot_dimension_numbers<[1], [0], [0], [1], [0, 0, 1, 1], [], []>} : vector<2x32xf32>, vector<32x128xf32>, vector<2x128xf32> -> vector<2x128xf32>
    %339 = vector.broadcast %28 : vector<1x128xf32> to vector<2x128xf32>
    %340 = arith.addf %338, %339 : vector<2x128xf32>
    %cst_61 = arith.constant dense<0.000000e+00> : vector<2x128xf32>
    %341 = tpu.matmul %337, %27, %cst_61 {dimension_numbers = #tpu.dot_dimension_numbers<[1], [0], [0], [1], [0, 0, 1, 1], [], []>} : vector<2x32xf32>, vector<32x128xf32>, vector<2x128xf32> -> vector<2x128xf32>
    %342 = arith.addf %340, %341 : vector<2x128xf32>
    %343 = arith.negf %342 : vector<2x128xf32>
    %344 = math.exp %343 : vector<2x128xf32>
    %cst_62 = arith.constant 1.000000e+00 : f32
    %345 = vector.broadcast %cst_62 : f32 to vector<2x128xf32>
    %346 = arith.addf %345, %344 : vector<2x128xf32>
    %347 = arith.divf %345, %346 : vector<2x128xf32>
    %348 = math.tanh %342 : vector<2x128xf32>
    %349 = vector.extract_strided_slice %347 {offsets = [0, 32], sizes = [2, 32], strides = [1, 1]} : vector<2x128xf32> to vector<2x32xf32>
    %350 = arith.mulf %349, %334 : vector<2x32xf32>
    %351 = vector.extract_strided_slice %347 {offsets = [0, 0], sizes = [2, 32], strides = [1, 1]} : vector<2x128xf32> to vector<2x32xf32>
    %352 = vector.extract_strided_slice %348 {offsets = [0, 64], sizes = [2, 32], strides = [1, 1]} : vector<2x128xf32> to vector<2x32xf32>
    %353 = arith.mulf %351, %352 : vector<2x32xf32>
    %354 = arith.addf %350, %353 : vector<2x32xf32>
    %355 = vector.extract_strided_slice %347 {offsets = [0, 96], sizes = [2, 32], strides = [1, 1]} : vector<2x128xf32> to vector<2x32xf32>
    %356 = math.tanh %354 : vector<2x32xf32>
    %357 = arith.mulf %355, %356 : vector<2x32xf32>
    %c136 = arith.constant 136 : index
    %c0_63 = arith.constant 0 : index
    %358 = vector.load %arg1[%c136, %c0_63] : memref<336x128xf32, #tpu.memory_space<vmem>>, vector<32x128xf32>
    %cst_64 = arith.constant dense<0.000000e+00> : vector<2x128xf32>
    %359 = tpu.matmul %357, %358, %cst_64 {dimension_numbers = #tpu.dot_dimension_numbers<[1], [0], [0], [1], [0, 0, 1, 1], [], []>} : vector<2x32xf32>, vector<32x128xf32>, vector<2x128xf32> -> vector<2x128xf32>
    %c168 = arith.constant 168 : index
    %c0_65 = arith.constant 0 : index
    %360 = vector.load %arg1[%c168, %c0_65] : memref<336x128xf32, #tpu.memory_space<vmem>>, vector<1x128xf32>
    %361 = vector.broadcast %360 : vector<1x128xf32> to vector<2x128xf32>
    %362 = arith.addf %359, %361 : vector<2x128xf32>
    %363 = arith.negf %362 : vector<2x128xf32>
    %364 = math.exp %363 : vector<2x128xf32>
    %cst_66 = arith.constant 1.000000e+00 : f32
    %365 = vector.broadcast %cst_66 : f32 to vector<2x128xf32>
    %366 = arith.addf %365, %364 : vector<2x128xf32>
    %367 = arith.divf %365, %366 : vector<2x128xf32>
    %368 = vector.extract_strided_slice %367 {offsets = [0, 0], sizes = [2, 32], strides = [1, 1]} : vector<2x128xf32> to vector<2x32xf32>
    %c176 = arith.constant 176 : index
    %c0_67 = arith.constant 0 : index
    %369 = vector.load %arg1[%c176, %c0_67] : memref<336x128xf32, #tpu.memory_space<vmem>>, vector<32x128xf32>
    %cst_68 = arith.constant dense<0.000000e+00> : vector<2x128xf32>
    %370 = tpu.matmul %368, %369, %cst_68 {dimension_numbers = #tpu.dot_dimension_numbers<[1], [0], [0], [1], [0, 0, 1, 1], [], []>} : vector<2x32xf32>, vector<32x128xf32>, vector<2x128xf32> -> vector<2x128xf32>
    %c208 = arith.constant 208 : index
    %c0_69 = arith.constant 0 : index
    %371 = vector.load %arg1[%c208, %c0_69] : memref<336x128xf32, #tpu.memory_space<vmem>>, vector<1x128xf32>
    %372 = vector.broadcast %371 : vector<1x128xf32> to vector<2x128xf32>
    %373 = arith.addf %370, %372 : vector<2x128xf32>
    %374 = arith.negf %373 : vector<2x128xf32>
    %375 = math.exp %374 : vector<2x128xf32>
    %cst_70 = arith.constant 1.000000e+00 : f32
    %376 = vector.broadcast %cst_70 : f32 to vector<2x128xf32>
    %377 = arith.addf %376, %375 : vector<2x128xf32>
    %378 = arith.divf %376, %377 : vector<2x128xf32>
    %379 = vector.extract_strided_slice %378 {offsets = [0, 0], sizes = [2, 32], strides = [1, 1]} : vector<2x128xf32> to vector<2x32xf32>
    %c216 = arith.constant 216 : index
    %c0_71 = arith.constant 0 : index
    %380 = vector.load %arg1[%c216, %c0_71] : memref<336x128xf32, #tpu.memory_space<vmem>>, vector<32x128xf32>
    %cst_72 = arith.constant dense<0.000000e+00> : vector<2x128xf32>
    %381 = tpu.matmul %379, %380, %cst_72 {dimension_numbers = #tpu.dot_dimension_numbers<[1], [0], [0], [1], [0, 0, 1, 1], [], []>} : vector<2x32xf32>, vector<32x128xf32>, vector<2x128xf32> -> vector<2x128xf32>
    %c248 = arith.constant 248 : index
    %c0_73 = arith.constant 0 : index
    %382 = vector.load %arg1[%c248, %c0_73] : memref<336x128xf32, #tpu.memory_space<vmem>>, vector<1x128xf32>
    %383 = vector.broadcast %382 : vector<1x128xf32> to vector<2x128xf32>
    %384 = arith.addf %381, %383 : vector<2x128xf32>
    %385 = arith.negf %384 : vector<2x128xf32>
    %386 = math.exp %385 : vector<2x128xf32>
    %cst_74 = arith.constant 1.000000e+00 : f32
    %387 = vector.broadcast %cst_74 : f32 to vector<2x128xf32>
    %388 = arith.addf %387, %386 : vector<2x128xf32>
    %389 = arith.divf %387, %388 : vector<2x128xf32>
    %390 = vector.extract_strided_slice %389 {offsets = [0, 0], sizes = [2, 32], strides = [1, 1]} : vector<2x128xf32> to vector<2x32xf32>
    %c256 = arith.constant 256 : index
    %c0_75 = arith.constant 0 : index
    %391 = vector.load %arg1[%c256, %c0_75] : memref<336x128xf32, #tpu.memory_space<vmem>>, vector<32x128xf32>
    %cst_76 = arith.constant dense<0.000000e+00> : vector<2x128xf32>
    %392 = tpu.matmul %390, %391, %cst_76 {dimension_numbers = #tpu.dot_dimension_numbers<[1], [0], [0], [1], [0, 0, 1, 1], [], []>} : vector<2x32xf32>, vector<32x128xf32>, vector<2x128xf32> -> vector<2x128xf32>
    %c288 = arith.constant 288 : index
    %c0_77 = arith.constant 0 : index
    %393 = vector.load %arg1[%c288, %c0_77] : memref<336x128xf32, #tpu.memory_space<vmem>>, vector<1x128xf32>
    %394 = vector.broadcast %393 : vector<1x128xf32> to vector<2x128xf32>
    %395 = arith.addf %392, %394 : vector<2x128xf32>
    %396 = arith.negf %395 : vector<2x128xf32>
    %397 = math.exp %396 : vector<2x128xf32>
    %cst_78 = arith.constant 1.000000e+00 : f32
    %398 = vector.broadcast %cst_78 : f32 to vector<2x128xf32>
    %399 = arith.addf %398, %397 : vector<2x128xf32>
    %400 = arith.divf %398, %399 : vector<2x128xf32>
    %401 = vector.extract_strided_slice %400 {offsets = [0, 0], sizes = [2, 32], strides = [1, 1]} : vector<2x128xf32> to vector<2x32xf32>
    %c296 = arith.constant 296 : index
    %c0_79 = arith.constant 0 : index
    %402 = vector.load %arg1[%c296, %c0_79] : memref<336x128xf32, #tpu.memory_space<vmem>>, vector<32x128xf32>
    %cst_80 = arith.constant dense<0.000000e+00> : vector<2x128xf32>
    %403 = tpu.matmul %401, %402, %cst_80 {dimension_numbers = #tpu.dot_dimension_numbers<[1], [0], [0], [1], [0, 0, 1, 1], [], []>} : vector<2x32xf32>, vector<32x128xf32>, vector<2x128xf32> -> vector<2x128xf32>
    %c328 = arith.constant 328 : index
    %c0_81 = arith.constant 0 : index
    %404 = vector.load %arg1[%c328, %c0_81] : memref<336x128xf32, #tpu.memory_space<vmem>>, vector<1x128xf32>
    %405 = vector.broadcast %404 : vector<1x128xf32> to vector<2x128xf32>
    %406 = arith.addf %403, %405 : vector<2x128xf32>
    %407 = arith.negf %406 : vector<2x128xf32>
    %408 = math.exp %407 : vector<2x128xf32>
    %cst_82 = arith.constant 1.000000e+00 : f32
    %409 = vector.broadcast %cst_82 : f32 to vector<2x128xf32>
    %410 = arith.addf %409, %408 : vector<2x128xf32>
    %411 = arith.divf %409, %410 : vector<2x128xf32>
    %412 = vector.extract_strided_slice %411 {offsets = [0, 0], sizes = [2, 4], strides = [1, 1]} : vector<2x128xf32> to vector<2x4xf32>
    %c0_83 = arith.constant 0 : index
    %c0_84 = arith.constant 0 : index
    %413 = vector.load %arg2[%c0_83, %c0_84] : memref<2x4xf32, #tpu.memory_space<vmem>>, vector<2x4xf32>
    tpu.vector_store %arg2[%c0_83, %c0_84], %412 {strides = array<i32>} : memref<2x4xf32, #tpu.memory_space<vmem>>, vector<2x4xf32>,
    return
  }
}

</mosaic_0001>

<bundles_post_ra>
// kernel: tpu_custom_call.1
= control target key start
LH: loop header
LB: loop body
LE: loop exit
PB: predicated region body
PF: predicated region fallthrough
CT: control target
= control target key end

     0   :  { %7 = vsyncpa [#allocation3], 0  ;;  %s2389_s0 = inlined_call_operand.hbm [shape: f32[2,64], index: 0, kind: input, shape index: {}]   ;;  %s2390_s1 = inlined_call_operand.hbm [shape: f32[336,128], index: 1, kind: input, shape index: {}]   ;;  %s2391_s2 = inlined_call_operand.hbm [shape: f32[2,4], index: 2, kind: output, shape index: {}]  }
   0x1   :  { %8 = vsyncpa [#allocation6], 0 }
   0x2   :  { %9 = vsyncpa [#allocation4], 0  ;;  %s15_s11 = sshll.u32 %s2389_s0, 4  ;;  %s2036_s12 = smov [#allocation2]   ;;  %s16_s11 = int_to_ptr.hbm [resolvable:$true] %s15_s11 }
   0x3   :  { %s17_s13 = sshll.u32 %s2036_s12, 4  ;;  %s25_s16 = sshll.u32 %s2390_s1, 4  ;;  %s18_s13 = int_to_ptr.vmem [resolvable:$true] %s17_s13  ;;  %s26_s16 = int_to_ptr.hbm [resolvable:$true] %s25_s16 }
   0x4   :  { %20 = dma.hbm_to_vmem [thread:$0]  %s16_s11, 32, %s18_s13, [#allocation3]  }
   0x5   :  { %s2037_s17 = smov [#allocation5]   ;;  %s2038_s19 = smov 128  }
   0x6   :  { %s27_s18 = sshll.u32 %s2037_s17, 4  ;;  %s2039_s20 = smov 8   ;;  %s28_s18 = int_to_ptr.vmem [resolvable:$true] %s27_s18 }
   0x7   :  { %33 = dma.hbm_to_vmem [thread:$0]  %s26_s16, 5376, %s28_s18, [#allocation6], %s2038_s19, %s2038_s19, %s2039_s20  }
   0x8   :  { %2030 = dma.done.wait [#allocation3], 32  }
   0x9   :  { %2031 = vsyncadd [#allocation3], 4294967264 }
   0xa   :  { %2032 = dma.done.wait [#allocation6], 5376  }
   0xb   :  { %2033 = vsyncadd [#allocation6], 4294961920  ;;  %vm45_vm0 = vcmask 517120   ;;  %v42_v0 = vld [vmem:[#allocation2] sm:$0x3]  ;;  %v2040_v2 = vmov 64.0  }
   0xc   :  { %v46_v1 = vsel %vm45_vm0, %v42_v0, 0.0  ;;  %1798 = vrcp.f32 %v2040_v2  ;;  %v2075_v14 = vld [vmem:[#allocation5 + $0x30] sm:$0xff]  ;;  %v2079_v15 = vld [vmem:[#allocation5 + $0x28] sm:$0xff]  ;;  %v2085_v17 = vld [vmem:[#allocation5 + $0x20] sm:$0xff]  ;;  %v2041_v19 = vmov 0.0   ;;  %vm95_vm5 = vcmask 64512  }
   0xd   :  { %47 = vadd.xlane.f32.xlu0 %v46_v1  ;;  %135 = vmatpush.msra.mxu1 %v2075_v14  ;;  %v2083_v16 = vld [vmem:[#allocation5 + $0x10] sm:$0xff]  ;;  %v2089_v18 = vld [vmem:[#allocation5 + $0x18] sm:$0xff]  ;;  %v1789_v29 = vld [vmem:[#allocation5] ss:$0 sm:$0xff]  ;;  %s2042_s0 = smov 64   ;;  %s2043_s1 = smov 32  }
   0xe   :  { %222 = vmatpush.msra.mxu3 %v2075_v14  ;;  %114 = vmatpush.msra.mxu0 %v2083_v16  ;;  %v1790_v31 = vld [vmem:[#allocation5 + $0x8] ss:$0 sm:$0xff]  ;;  %v2106_v35 = vld [vmem:[#allocation5 + $0x38] ss:$0 sm:$0xff]  ;;  %s2044_s21 = smov 120   ;;  %v2118_v61 = vld [vmem:[#allocation5 + $0x70] sm:$0xff] }
   0xf   :  { %136 = vmatpush.msra.mxu1 %v2079_v15  ;;  %200 = vmatpush.msra.mxu2 %v2083_v16  ;;  %v2116_v60 = vld [vmem:[#allocation5 + $0x78] sm:$0xff]  ;;  %v2124_v63 = vld [vmem:[#allocation5 + $0x50] sm:$0xff]  ;;  %v2128_v1 = vld [vmem:[#allocation5 + $0x48] sm:$0xff]  ;;  %vm119_vm10 = vcmask 261120   ;;  %s2045_s22 = smov 112   ;;  %s2046_s23 = smov 104  }
  0x10   :  { %223 = vmatpush.msra.mxu3 %v2079_v15  ;;  %v2120_v62 = vld [vmem:[#allocation5 + $0x58] sm:$0xff]  ;;  %v2132_v2 = vld [vmem:[#allocation5 + $0x60] sm:$0xff]  ;;  %s2047_s24 = smov 96   ;;  %s2048_s25 = smov 88  }
  0x11   :  { %137 = vmatpush.msra.mxu1 %v2085_v17  ;;  %301 = vmatpush.msrb.mxu2 %v2116_v60  ;;  %s2049_s26 = smov 80   ;;  %s2050_s27 = smov 72  }
  0x12   :  { %v1799_v3 = vpop.eup %1798  ;;  %224 = vmatpush.msra.mxu3 %v2085_v17  ;;  %281 = vmatpush.msrb.mxu0 %v2120_v62  ;;  %s2051_s28 = smov [#allocation7]   ;;  %s1706_s4 = sshll.u32 %s2391_s2, 4  ;;  %s1707_s4 = int_to_ptr.hbm [resolvable:$true] %s1706_s4 }
  0x13   :  { %v50_v4 = vmul.f32 64.0, %v1799_v3  ;;  %vm54_vm1 = vweird.f32 %v1799_v3  ;;  %138 = vmatpush.msra.mxu1 %v2089_v18  ;;  %302 = vmatpush.msrb.mxu2 %v2118_v61  ;;  %s1704_s29 = sshll.u32 %s2051_s28, 4  ;;  %s1705_s29 = int_to_ptr.vmem [resolvable:$true] %s1704_s29 }
  0x14   :  { %139 = vmatmul.f32.vlgmr.msra.gmra.mxu1 %v2041_v19  ;;  %225 = vmatpush.msra.mxu3 %v2089_v18 }
  0x15   :  { %v51_v5 = vsub.f32 1.0, %v50_v4  ;;  %366 = vmatpush.msrb.mxu1 %v2083_v16  ;;  %282 = vmatpush.msrb.mxu0 %v2124_v63 }
  0x16   :  { %388 = vmatpush.msrb.mxu3 %v2075_v14 }
  0x17   :  { %v52_v6 = vmul.f32 %v1799_v3, %v51_v5  ;;  %536 = vmatpush.msra.mxu1 %v2083_v16  ;;  %283 = vmatpush.msrb.mxu0 %v2128_v1 }
  0x18   :  { %389 = vmatpush.msrb.mxu3 %v2079_v15 }
  0x19   :  { %v53_v7 = vadd.f32 %v1799_v3, %v52_v6 }
  0x1a   :  { %390 = vmatpush.msrb.mxu3 %v2085_v17 }
  0x1b   :  { %v55_v8 = vsel %vm54_vm1, %v1799_v3, %v53_v7  ;;  %v2137_v3 = vld [vmem:[#allocation5 + $0x40] sm:$0xff] }
  0x1c   :  { %391 = vmatpush.msrb.mxu3 %v2089_v18  ;;  %284 = vmatpush.msrb.mxu0 %v2137_v3 }
  0x80   :  { %v48_v9 = vpop.xlane.xlu0 %47 }
  0x81   :  { %v56_v10 = vmul.f32 %v55_v8, %v48_v9  ;;  %v2165_v9 = vld [vmem:[#allocation5 + $0x80] ss:$0 sm:$0xff] }
  0x83   :  { %v57_v11 = vsub.f32 %v42_v0, %v56_v10  ;;  %v2126_v0 = vld [vmem:[#allocation5 + $0x68] sm:$0xff] }
  0x84   :  { %303 = vmatpush.msrb.mxu2 %v2126_v0 }
  0x85   :  { %v58_v12 = vmul.f32 %v57_v11, %v57_v11 }
  0x86   :  { %304 = vmatpush.msrb.mxu2 %v2132_v2 }
  0x87   :  { %v59_v13 = vsel %vm45_vm0, %v58_v12, 0.0 }
  0x88   :  { %60 = vadd.xlane.f32.xlu0 %v59_v13 }
  0x91   :  { %v140_v37 = vpop.f32.mrf.mxu1 }
  0xfb   :  { %v61_v20 = vpop.xlane.xlu0 %60 }
  0xfc   :  { %v62_v21 = vmul.f32 %v61_v20, %v55_v8 }
  0xfe   :  { %v63_v22 = vadd.f32 1e-05, %v62_v21 }
 0x100   :  { %1800 = vrsqrt.f32 %v63_v22  ;;  %vm70_vm3 = vweird.f32 %v63_v22 }
 0x106   :  { %v1801_v23 = vpop.eup %1800 }
 0x107   :  { %v65_v24 = vmul.f32 %v1801_v23, %v63_v22  ;;  %vm71_vm2 = vweird.f32 %v1801_v23 }
 0x108   :  { %vm72_vm4 = vmor %vm70_vm3, %vm71_vm2 }
 0x109   :  { %v66_v25 = vmul.f32 %v1801_v23, %v65_v24 }
 0x10b   :  { %v67_v26 = vmul.f32 0.5, %v66_v25 }
 0x10d   :  { %v68_v27 = vsub.f32 1.5, %v67_v26 }
 0x10f   :  { %v69_v28 = vmul.f32 %v1801_v23, %v68_v27 }
 0x111   :  { %v73_v30 = vsel %vm72_vm4, %v1801_v23, %v69_v28 }
 0x112   :  { %v74_v32 = vmul.f32 %v73_v30, %v57_v11 }
 0x114   :  { %v76_v33 = vmul.f32 %v1789_v29, %v74_v32 }
 0x116   :  { %v2102_v34 = vadd.f32 %v1790_v31, %v76_v33 }
 0x118   :  { %1717 = vmatmul.msk.f32.vlgmr.msra.gmra.mxu0 %vm95_vm5, %v2102_v34 }
 0x119   :  { %446 = vmatpush.msra.mxu0 %v2120_v62 }
 0x11b   :  { %447 = vmatpush.msra.mxu0 %v2124_v63 }
 0x11d   :  { %448 = vmatpush.msra.mxu0 %v2128_v1 }
 0x11f   :  { %449 = vmatpush.msra.mxu0 %v2137_v3 }
 0x195   :  { %v116_v36 = vpop.f32.mrf.mxu0 }
 0x196   :  { %v117_v38 = vadd.f32 %v2106_v35, %v116_v36 }
 0x198   :  { %v143_v39 = vadd.f32 %v140_v37, %v117_v38 }
 0x19a   :  { %1802 = vtanh.f32 %v143_v39  ;;  %v1718_v41 = vmul.f32 -1.442695, %v143_v39 }
 0x19c   :  { %1804 = vpow2.f32 %v1718_v41 }
 0x1a0   :  { %v1803_v40 = vpop.eup %1802 }
 0x1a1   :  { %166 = vrot.lane.b32.xlu1 %v1803_v40, %s2042_s0 }
 0x1a2   :  { %v1805_v42 = vpop.eup %1804 }
 0x1a3   :  { %v147_v43 = vadd.f32 1.0, %v1805_v42 }
 0x1a5   :  { %1806 = vrcp.f32 %v147_v43  ;;  %v159_v49 = vand.u32 2147483648, %v147_v43  ;;  %vm153_vm7 = vweird.f32 %v147_v43  ;;  %v157_v50 = vand.u32 2147483647, %v147_v43 }
 0x1a7   :  { %v160_v52 = vor.u32 1.1754944e-38, %v159_v49  ;;  %vm158_vm9 = vcmp.eq.f32.partialorder %v157_v50, 8.507059e+37 }
 0x1ab   :  { %v1807_v44 = vpop.eup %1806 }
 0x1ac   :  { %v149_v45 = vmul.f32 %v1807_v44, %v147_v43  ;;  %vm154_vm6 = vweird.f32 %v1807_v44 }
 0x1ad   :  { %vm155_vm8 = vmor %vm153_vm7, %vm154_vm6 }
 0x1ae   :  { %v150_v46 = vsub.f32 1.0, %v149_v45 }
 0x1b0   :  { %v151_v47 = vmul.f32 %v1807_v44, %v150_v46 }
 0x1b2   :  { %v152_v48 = vadd.f32 %v1807_v44, %v151_v47 }
 0x1b4   :  { %v156_v51 = vsel %vm155_vm8, %v1807_v44, %v152_v48 }
 0x1b5   :  { %v161_v54 = vsel %vm158_vm9, %v160_v52, %v156_v51 }
 0x1b6   :  { %v164_v56 = vmul.f32 0.0, %v161_v54 }
 0x213   :  { %v167_v53 = vpop.permute.xlu1 %166 }
 0x214   :  { %v169_v55 = vmul.f32 %v167_v53, %v161_v54 }
 0x216   :  { %171 = vrot.lane.b32.xlu1 %v169_v55, %s2043_s1 }
 0x288   :  { %v172_v57 = vpop.permute.xlu1 %171 }
 0x289   :  { %v2111_v58 = vadd.f32 %v172_v57, %v164_v56 }
 0x28b   :  { %1808 = vtanh.f32 %v2111_v58 }
 0x291   :  { %v1809_v59 = vpop.eup %1808 }
 0x292   :  { %177 = vrot.lane.b32.xlu2 %v1809_v59, %s2042_s0 }
 0x29a   :  { %181 = vrot.lane.b32.xlu2 %v2102_v34, %s2044_s21 }
 0x2ec   :  { %v178_v4 = vpop.permute.xlu2 %177 }
 0x2ed   :  { %v180_v5 = vmul.f32 %v178_v4, %v161_v54 }
 0x2ef   :  { %206 = vrot.lane.b32.xlu0 %v180_v5, %s2043_s1 }
 0x2f4   :  { %v182_v6 = vpop.permute.xlu2 %181 }
 0x2f5   :  { %1719 = vmatmul.msk.f32.vlgmr.msra.gmra.mxu2 %vm95_vm5, %v182_v6 }
 0x2f6   :  { %471 = vmatpush.msra.mxu2 %v2116_v60 }
 0x2f8   :  { %472 = vmatpush.msra.mxu2 %v2118_v61 }
 0x2fa   :  { %473 = vmatpush.msra.mxu2 %v2126_v0 }
 0x2fc   :  { %474 = vmatpush.msra.mxu2 %v2132_v2 }
 0x2fd   :  { %305 = vmatmul.f32.vlgmr.msrb.gmra.mxu2 %v2041_v19 }
 0x2fe   :  { %641 = vmatpush.msrb.mxu2 %v2116_v60 }
 0x300   :  { %642 = vmatpush.msrb.mxu2 %v2118_v61 }
 0x302   :  { %643 = vmatpush.msrb.mxu2 %v2126_v0 }
 0x304   :  { %644 = vmatpush.msrb.mxu2 %v2132_v2 }
 0x361   :  { %v207_v7 = vpop.permute.xlu0 %206 }
 0x362   :  { %1720 = vmatmul.msk.f32.vlgmr.msra.gmra.mxu3 %vm119_vm10, %v207_v7  ;;  %1722 = vmatmul.msk.f32.vlgmr.msrb.gmra.mxu0 %vm119_vm10, %v207_v7 }
 0x363   :  { %558 = vmatpush.msra.mxu3 %v2075_v14  ;;  %616 = vmatpush.msrb.mxu0 %v2120_v62 }
 0x365   :  { %559 = vmatpush.msra.mxu3 %v2079_v15  ;;  %617 = vmatpush.msrb.mxu0 %v2124_v63 }
 0x367   :  { %560 = vmatpush.msra.mxu3 %v2085_v17  ;;  %618 = vmatpush.msrb.mxu0 %v2128_v1 }
 0x369   :  { %561 = vmatpush.msra.mxu3 %v2089_v18  ;;  %619 = vmatpush.msrb.mxu0 %v2137_v3 }
 0x378   :  { %v202_v8 = vpop.f32.mrf.mxu2 }
 0x379   :  { %v203_v19 = vadd.f32 %v2106_v35, %v202_v8 }
 0x380   :  { %v306_v11 = vpop.f32.mrf.mxu2 }
 0x3df   :  { %v286_v10 = vpop.f32.mrf.mxu0 }
 0x3e0   :  { %v287_v12 = vadd.f32 %v2165_v9, %v286_v10 }
 0x3e2   :  { %v309_v13 = vadd.f32 %v306_v11, %v287_v12 }
 0x3e4   :  { %1810 = vtanh.f32 %v309_v13  ;;  %v1723_v27 = vmul.f32 -1.442695, %v309_v13 }
 0x3e5   :  { %v227_v20 = vpop.f32.mrf.mxu3 }
 0x3e6   :  { %v230_v21 = vadd.f32 %v227_v20, %v203_v19 }
 0x3e8   :  { %1812 = vtanh.f32 %v230_v21  ;;  %v1721_v24 = vmul.f32 -1.442695, %v230_v21 }
 0x3ea   :  { %v1811_v22 = vpop.eup %1810  ;;  %1814 = vpow2.f32 %v1721_v24 }
 0x3eb   :  { %332 = vrot.lane.b32.xlu1 %v1811_v22, %s2042_s0 }
 0x3ee   :  { %v1813_v23 = vpop.eup %1812 }
 0x3ef   :  { %253 = vrot.lane.b32.xlu2 %v1813_v23, %s2042_s0 }
 0x3f0   :  { %v1815_v25 = vpop.eup %1814 }
 0x3f1   :  { %v234_v26 = vadd.f32 1.0, %v1815_v25 }
 0x3f3   :  { %1816 = vrcp.f32 %v234_v26  ;;  %v246_v37 = vand.u32 2147483648, %v234_v26  ;;  %vm240_vm12 = vweird.f32 %v234_v26  ;;  %v244_v38 = vand.u32 2147483647, %v234_v26 }
 0x3f4   :  { %1818 = vpow2.f32 %v1723_v27 }
 0x3f5   :  { %v247_v41 = vor.u32 1.1754944e-38, %v246_v37  ;;  %vm245_vm14 = vcmp.eq.f32.partialorder %v244_v38, 8.507059e+37 }
 0x3f9   :  { %v1817_v28 = vpop.eup %1816 }
 0x3fa   :  { %v236_v29 = vmul.f32 %v1817_v28, %v234_v26  ;;  %v1819_v30 = vpop.eup %1818  ;;  %vm241_vm11 = vweird.f32 %v1817_v28 }
 0x3fb   :  { %v313_v32 = vadd.f32 1.0, %v1819_v30  ;;  %vm242_vm13 = vmor %vm240_vm12, %vm241_vm11 }
 0x3fc   :  { %v237_v31 = vsub.f32 1.0, %v236_v29 }
 0x3fd   :  { %1820 = vrcp.f32 %v313_v32  ;;  %v325_v49 = vand.u32 2147483648, %v313_v32  ;;  %vm319_vm0 = vweird.f32 %v313_v32  ;;  %v323_v50 = vand.u32 2147483647, %v313_v32 }
 0x3fe   :  { %v238_v33 = vmul.f32 %v1817_v28, %v237_v31 }
 0x3ff   :  { %v326_v52 = vor.u32 1.1754944e-38, %v325_v49  ;;  %vm324_vm2 = vcmp.eq.f32.partialorder %v323_v50, 8.507059e+37 }
 0x400   :  { %v239_v36 = vadd.f32 %v1817_v28, %v238_v33 }
 0x402   :  { %v243_v39 = vsel %vm242_vm13, %v1817_v28, %v239_v36 }
 0x403   :  { %v1821_v40 = vpop.eup %1820  ;;  %v248_v43 = vsel %vm245_vm14, %v247_v41, %v243_v39 }
 0x404   :  { %v315_v45 = vmul.f32 %v1821_v40, %v313_v32  ;;  %vm320_vm15 = vweird.f32 %v1821_v40  ;;  %v251_v56 = vmul.f32 %v248_v43, %v2111_v58 }
 0x405   :  { %vm321_vm1 = vmor %vm319_vm0, %vm320_vm15 }
 0x406   :  { %v316_v46 = vsub.f32 1.0, %v315_v45 }
 0x408   :  { %v317_v47 = vmul.f32 %v1821_v40, %v316_v46 }
 0x40a   :  { %v318_v48 = vadd.f32 %v1821_v40, %v317_v47 }
 0x40c   :  { %v322_v51 = vsel %vm321_vm1, %v1821_v40, %v318_v48 }
 0x40d   :  { %v327_v54 = vsel %vm324_vm2, %v326_v52, %v322_v51 }
 0x40e   :  { %v330_v5 = vmul.f32 0.0, %v327_v54 }
 0x449   :  { %v254_v42 = vpop.permute.xlu2 %253 }
 0x44a   :  { %v256_v44 = vmul.f32 %v254_v42, %v248_v43 }
 0x44c   :  { %258 = vrot.lane.b32.xlu2 %v256_v44, %s2043_s1 }
 0x45d   :  { %v333_v53 = vpop.permute.xlu1 %332 }
 0x45e   :  { %v335_v55 = vmul.f32 %v333_v53, %v327_v54 }
 0x460   :  { %337 = vrot.lane.b32.xlu1 %v335_v55, %s2043_s1 }
 0x4a6   :  { %v259_v57 = vpop.permute.xlu2 %258 }
 0x4a7   :  { %v2174_v59 = vadd.f32 %v259_v57, %v251_v56 }
 0x4a9   :  { %1822 = vtanh.f32 %v2174_v59 }
 0x4af   :  { %v1823_v4 = vpop.eup %1822 }
 0x4b0   :  { %264 = vrot.lane.b32.xlu2 %v1823_v4, %s2042_s0 }
 0x4b8   :  { %347 = vrot.lane.b32.xlu2 %v2102_v34, %s2045_s22 }
 0x4d2   :  { %v338_v6 = vpop.permute.xlu1 %337 }
 0x4d3   :  { %v2179_v7 = vadd.f32 %v338_v6, %v330_v5 }
 0x4d5   :  { %1824 = vtanh.f32 %v2179_v7 }
 0x4db   :  { %v1825_v8 = vpop.eup %1824 }
 0x4dc   :  { %343 = vrot.lane.b32.xlu1 %v1825_v8, %s2042_s0 }
 0x50a   :  { %v265_v58 = vpop.permute.xlu2 %264 }
 0x50b   :  { %v267_v10 = vmul.f32 %v265_v58, %v248_v43 }
 0x50d   :  { %372 = vrot.lane.b32.xlu1 %v267_v10, %s2043_s1 }
 0x512   :  { %v348_v11 = vpop.permute.xlu2 %347 }
 0x513   :  { %1724 = vmatmul.msk.f32.vlgmr.msrb.gmra.mxu1 %vm95_vm5, %v348_v11 }
 0x514   :  { %706 = vmatpush.msrb.mxu1 %v2083_v16 }
 0x54e   :  { %v344_v12 = vpop.permute.xlu1 %343 }
 0x54f   :  { %v346_v13 = vmul.f32 %v344_v12, %v327_v54 }
 0x551   :  { %455 = vrot.lane.b32.xlu0 %v346_v13, %s2043_s1 }
 0x57f   :  { %v373_v19 = vpop.permute.xlu1 %372 }
 0x580   :  { %1725 = vmatmul.msk.f32.vlgmr.msrb.gmra.mxu3 %vm119_vm10, %v373_v19  ;;  %1727 = vmatmul.msk.f32.vlgmr.msra.gmra.mxu0 %vm119_vm10, %v373_v19 }
 0x581   :  { %728 = vmatpush.msrb.mxu3 %v2075_v14  ;;  %786 = vmatpush.msra.mxu0 %v2120_v62 }
 0x583   :  { %729 = vmatpush.msrb.mxu3 %v2079_v15  ;;  %787 = vmatpush.msra.mxu0 %v2124_v63 }
 0x585   :  { %730 = vmatpush.msrb.mxu3 %v2085_v17  ;;  %788 = vmatpush.msra.mxu0 %v2128_v1 }
 0x587   :  { %731 = vmatpush.msrb.mxu3 %v2089_v18  ;;  %789 = vmatpush.msra.mxu0 %v2137_v3 }
 0x590   :  { %v368_v21 = vpop.f32.mrf.mxu1 }
 0x591   :  { %v369_v22 = vadd.f32 %v2106_v35, %v368_v21 }
 0x5c3   :  { %v456_v20 = vpop.permute.xlu0 %455 }
 0x5c4   :  { %1728 = vmatmul.msk.f32.vlgmr.msra.gmra.mxu2 %vm119_vm10, %v456_v20 }
 0x5c5   :  { %811 = vmatpush.msra.mxu2 %v2116_v60 }
 0x5c7   :  { %812 = vmatpush.msra.mxu2 %v2118_v61 }
 0x5c9   :  { %813 = vmatpush.msra.mxu2 %v2126_v0 }
 0x5cb   :  { %814 = vmatpush.msra.mxu2 %v2132_v2 }
 0x5fd   :  { %v451_v26 = vpop.f32.mrf.mxu0 }
 0x5fe   :  { %v452_v27 = vadd.f32 %v2165_v9, %v451_v26 }
 0x603   :  { %v393_v23 = vpop.f32.mrf.mxu3 }
 0x604   :  { %v396_v24 = vadd.f32 %v393_v23, %v369_v22 }
 0x606   :  { %1826 = vtanh.f32 %v396_v24  ;;  %v1726_v31 = vmul.f32 -1.442695, %v396_v24 }
 0x60c   :  { %v1827_v25 = vpop.eup %1826 }
 0x60d   :  { %419 = vrot.lane.b32.xlu1 %v1827_v25, %s2042_s0 }
 0x647   :  { %v476_v28 = vpop.f32.mrf.mxu2 }
 0x648   :  { %v479_v29 = vadd.f32 %v476_v28, %v452_v27 }
 0x64a   :  { %1828 = vtanh.f32 %v479_v29  ;;  %v1729_v48 = vmul.f32 -1.442695, %v479_v29 }
 0x64b   :  { %1830 = vpow2.f32 %v1726_v31 }
 0x650   :  { %v1829_v30 = vpop.eup %1828 }
 0x651   :  { %502 = vrot.lane.b32.xlu0 %v1829_v30, %s2042_s0  ;;  %v1831_v32 = vpop.eup %1830 }
 0x652   :  { %v400_v33 = vadd.f32 1.0, %v1831_v32 }
 0x654   :  { %1832 = vrcp.f32 %v400_v33  ;;  %v412_v41 = vand.u32 2147483648, %v400_v33  ;;  %vm406_vm4 = vweird.f32 %v400_v33  ;;  %v410_v42 = vand.u32 2147483647, %v400_v33 }
 0x655   :  { %1834 = vpow2.f32 %v1729_v48 }
 0x656   :  { %v413_v44 = vor.u32 1.1754944e-38, %v412_v41  ;;  %vm411_vm7 = vcmp.eq.f32.partialorder %v410_v42, 8.507059e+37 }
 0x65a   :  { %v1833_v36 = vpop.eup %1832 }
 0x65b   :  { %v402_v37 = vmul.f32 %v1833_v36, %v400_v33  ;;  %vm407_vm3 = vweird.f32 %v1833_v36  ;;  %v1835_v49 = vpop.eup %1834 }
 0x65c   :  { %vm408_vm6 = vmor %vm406_vm4, %vm407_vm3  ;;  %v483_v50 = vadd.f32 1.0, %v1835_v49 }
 0x65d   :  { %v403_v38 = vsub.f32 1.0, %v402_v37 }
 0x65e   :  { %1836 = vrcp.f32 %v483_v50  ;;  %v495_v56 = vand.u32 2147483648, %v483_v50  ;;  %vm489_vm9 = vweird.f32 %v483_v50  ;;  %v493_v57 = vand.u32 2147483647, %v483_v50 }
 0x65f   :  { %v404_v39 = vmul.f32 %v1833_v36, %v403_v38 }
 0x660   :  { %v496_v5 = vor.u32 1.1754944e-38, %v495_v56  ;;  %vm494_vm12 = vcmp.eq.f32.partialorder %v493_v57, 8.507059e+37 }
 0x661   :  { %v405_v40 = vadd.f32 %v1833_v36, %v404_v39 }
 0x663   :  { %v409_v43 = vsel %vm408_vm6, %v1833_v36, %v405_v40 }
 0x664   :  { %v414_v46 = vsel %vm411_vm7, %v413_v44, %v409_v43  ;;  %v1837_v51 = vpop.eup %1836 }
 0x665   :  { %v485_v52 = vmul.f32 %v1837_v51, %v483_v50  ;;  %vm490_vm8 = vweird.f32 %v1837_v51  ;;  %v417_v10 = vmul.f32 %v414_v46, %v2174_v59 }
 0x666   :  { %vm491_vm11 = vmor %vm489_vm9, %vm490_vm8 }
 0x667   :  { %v486_v53 = vsub.f32 1.0, %v485_v52 }
 0x669   :  { %v487_v54 = vmul.f32 %v1837_v51, %v486_v53 }
 0x66b   :  { %v488_v55 = vadd.f32 %v1837_v51, %v487_v54 }
 0x66d   :  { %v492_v4 = vsel %vm491_vm11, %v1837_v51, %v488_v55 }
 0x66e   :  { %v497_v8 = vsel %vm494_vm12, %v496_v5, %v492_v4 }
 0x66f   :  { %v500_v19 = vmul.f32 %v497_v8, %v2179_v7 }
 0x67f   :  { %v420_v45 = vpop.permute.xlu1 %419 }
 0x680   :  { %v422_v47 = vmul.f32 %v420_v45, %v414_v46 }
 0x682   :  { %424 = vrot.lane.b32.xlu0 %v422_v47, %s2043_s1 }
 0x6c3   :  { %v503_v6 = vpop.permute.xlu0 %502 }
 0x6c4   :  { %v505_v58 = vmul.f32 %v503_v6, %v497_v8 }
 0x6c6   :  { %507 = vrot.lane.b32.xlu2 %v505_v58, %s2043_s1 }
 0x6f4   :  { %v425_v11 = vpop.permute.xlu0 %424 }
 0x6f5   :  { %v2209_v12 = vadd.f32 %v425_v11, %v417_v10 }
 0x6f7   :  { %1838 = vtanh.f32 %v2209_v12 }
 0x6fd   :  { %v1839_v13 = vpop.eup %1838 }
 0x6fe   :  { %430 = vrot.lane.b32.xlu2 %v1839_v13, %s2042_s0 }
 0x706   :  { %517 = vrot.lane.b32.xlu2 %v2102_v34, %s2046_s23 }
 0x720   :  { %v508_v20 = vpop.permute.xlu2 %507 }
 0x721   :  { %v2215_v21 = vadd.f32 %v508_v20, %v500_v19 }
 0x723   :  { %1840 = vtanh.f32 %v2215_v21 }
 0x729   :  { %v1841_v22 = vpop.eup %1840 }
 0x72a   :  { %513 = vrot.lane.b32.xlu1 %v1841_v22, %s2042_s0 }
 0x758   :  { %v431_v59 = vpop.permute.xlu2 %430 }
 0x759   :  { %v433_v23 = vmul.f32 %v431_v59, %v414_v46 }
 0x75b   :  { %542 = vrot.lane.b32.xlu1 %v433_v23, %s2043_s1 }
 0x760   :  { %v518_v24 = vpop.permute.xlu2 %517 }
 0x761   :  { %1730 = vmatmul.msk.f32.vlgmr.msra.gmra.mxu1 %vm95_vm5, %v518_v24 }
 0x762   :  { %876 = vmatpush.msra.mxu1 %v2083_v16 }
 0x79c   :  { %v514_v25 = vpop.permute.xlu1 %513 }
 0x79d   :  { %v516_v26 = vmul.f32 %v514_v25, %v497_v8 }
 0x79f   :  { %625 = vrot.lane.b32.xlu0 %v516_v26, %s2043_s1 }
 0x7cd   :  { %v543_v7 = vpop.permute.xlu1 %542 }
 0x7ce   :  { %1731 = vmatmul.msk.f32.vlgmr.msra.gmra.mxu3 %vm119_vm10, %v543_v7  ;;  %1733 = vmatmul.msk.f32.vlgmr.msrb.gmra.mxu0 %vm119_vm10, %v543_v7 }
 0x7cf   :  { %898 = vmatpush.msra.mxu3 %v2075_v14  ;;  %956 = vmatpush.msrb.mxu0 %v2120_v62 }
 0x7d1   :  { %899 = vmatpush.msra.mxu3 %v2079_v15  ;;  %957 = vmatpush.msrb.mxu0 %v2124_v63 }
 0x7d3   :  { %900 = vmatpush.msra.mxu3 %v2085_v17  ;;  %958 = vmatpush.msrb.mxu0 %v2128_v1 }
 0x7d5   :  { %901 = vmatpush.msra.mxu3 %v2089_v18  ;;  %959 = vmatpush.msrb.mxu0 %v2137_v3 }
 0x7de   :  { %v538_v28 = vpop.f32.mrf.mxu1 }
 0x7df   :  { %v539_v29 = vadd.f32 %v2106_v35, %v538_v28 }
 0x811   :  { %v626_v27 = vpop.permute.xlu0 %625 }
 0x812   :  { %1734 = vmatmul.msk.f32.vlgmr.msrb.gmra.mxu2 %vm119_vm10, %v626_v27 }
 0x813   :  { %981 = vmatpush.msrb.mxu2 %v2116_v60 }
 0x815   :  { %982 = vmatpush.msrb.mxu2 %v2118_v61 }
 0x817   :  { %983 = vmatpush.msrb.mxu2 %v2126_v0 }
 0x819   :  { %984 = vmatpush.msrb.mxu2 %v2132_v2 }
 0x84b   :  { %v621_v33 = vpop.f32.mrf.mxu0 }
 0x84c   :  { %v622_v36 = vadd.f32 %v2165_v9, %v621_v33 }
 0x851   :  { %v563_v30 = vpop.f32.mrf.mxu3 }
 0x852   :  { %v566_v31 = vadd.f32 %v563_v30, %v539_v29 }
 0x854   :  { %1842 = vtanh.f32 %v566_v31  ;;  %v1732_v40 = vmul.f32 -1.442695, %v566_v31 }
 0x85a   :  { %v1843_v32 = vpop.eup %1842 }
 0x85b   :  { %589 = vrot.lane.b32.xlu1 %v1843_v32, %s2042_s0 }
 0x895   :  { %v646_v37 = vpop.f32.mrf.mxu2 }
 0x896   :  { %v649_v38 = vadd.f32 %v646_v37, %v622_v36 }
 0x898   :  { %1844 = vtanh.f32 %v649_v38  ;;  %v1735_v55 = vmul.f32 -1.442695, %v649_v38 }
 0x899   :  { %1846 = vpow2.f32 %v1732_v40 }
 0x89e   :  { %v1845_v39 = vpop.eup %1844 }
 0x89f   :  { %672 = vrot.lane.b32.xlu0 %v1845_v39, %s2042_s0  ;;  %v1847_v41 = vpop.eup %1846 }
 0x8a0   :  { %v570_v42 = vadd.f32 1.0, %v1847_v41 }
 0x8a2   :  { %1848 = vrcp.f32 %v570_v42  ;;  %v582_v48 = vand.u32 2147483648, %v570_v42  ;;  %vm576_vm14 = vweird.f32 %v570_v42  ;;  %v580_v49 = vand.u32 2147483647, %v570_v42 }
 0x8a3   :  { %1850 = vpow2.f32 %v1735_v55 }
 0x8a4   :  { %v583_v51 = vor.u32 1.1754944e-38, %v582_v48  ;;  %vm581_vm0 = vcmp.eq.f32.partialorder %v580_v49, 8.507059e+37 }
 0x8a8   :  { %v1849_v43 = vpop.eup %1848 }
 0x8a9   :  { %v572_v44 = vmul.f32 %v1849_v43, %v570_v42  ;;  %vm577_vm13 = vweird.f32 %v1849_v43  ;;  %v1851_v56 = vpop.eup %1850 }
 0x8aa   :  { %vm578_vm15 = vmor %vm576_vm14, %vm577_vm13  ;;  %v653_v57 = vadd.f32 1.0, %v1851_v56 }
 0x8ab   :  { %v573_v45 = vsub.f32 1.0, %v572_v44 }
 0x8ac   :  { %1852 = vrcp.f32 %v653_v57  ;;  %v665_v10 = vand.u32 2147483648, %v653_v57  ;;  %vm659_vm2 = vweird.f32 %v653_v57  ;;  %v663_v11 = vand.u32 2147483647, %v653_v57 }
 0x8ad   :  { %v574_v46 = vmul.f32 %v1849_v43, %v573_v45 }
 0x8ae   :  { %v666_v19 = vor.u32 1.1754944e-38, %v665_v10  ;;  %vm664_vm4 = vcmp.eq.f32.partialorder %v663_v11, 8.507059e+37 }
 0x8af   :  { %v575_v47 = vadd.f32 %v1849_v43, %v574_v46 }
 0x8b1   :  { %v579_v50 = vsel %vm578_vm15, %v1849_v43, %v575_v47 }
 0x8b2   :  { %v584_v53 = vsel %vm581_vm0, %v583_v51, %v579_v50  ;;  %v1853_v4 = vpop.eup %1852 }
 0x8b3   :  { %v655_v5 = vmul.f32 %v1853_v4, %v653_v57  ;;  %vm660_vm1 = vweird.f32 %v1853_v4  ;;  %v587_v23 = vmul.f32 %v584_v53, %v2209_v12 }
 0x8b4   :  { %vm661_vm3 = vmor %vm659_vm2, %vm660_vm1 }
 0x8b5   :  { %v656_v6 = vsub.f32 1.0, %v655_v5 }
 0x8b7   :  { %v657_v8 = vmul.f32 %v1853_v4, %v656_v6 }
 0x8b9   :  { %v658_v58 = vadd.f32 %v1853_v4, %v657_v8 }
 0x8bb   :  { %v662_v13 = vsel %vm661_vm3, %v1853_v4, %v658_v58 }
 0x8bc   :  { %v667_v22 = vsel %vm664_vm4, %v666_v19, %v662_v13 }
 0x8bd   :  { %v670_v7 = vmul.f32 %v667_v22, %v2215_v21 }
 0x8cd   :  { %v590_v52 = vpop.permute.xlu1 %589 }
 0x8ce   :  { %v592_v54 = vmul.f32 %v590_v52, %v584_v53 }
 0x8d0   :  { %594 = vrot.lane.b32.xlu0 %v592_v54, %s2043_s1 }
 0x911   :  { %v673_v20 = vpop.permute.xlu0 %672 }
 0x912   :  { %v675_v59 = vmul.f32 %v673_v20, %v667_v22 }
 0x914   :  { %677 = vrot.lane.b32.xlu2 %v675_v59, %s2043_s1 }
 0x942   :  { %v595_v24 = vpop.permute.xlu0 %594 }
 0x943   :  { %v2245_v25 = vadd.f32 %v595_v24, %v587_v23 }
 0x945   :  { %1854 = vtanh.f32 %v2245_v25 }
 0x94b   :  { %v1855_v26 = vpop.eup %1854 }
 0x94c   :  { %600 = vrot.lane.b32.xlu2 %v1855_v26, %s2042_s0 }
 0x954   :  { %687 = vrot.lane.b32.xlu2 %v2102_v34, %s2047_s24 }
 0x96e   :  { %v678_v27 = vpop.permute.xlu2 %677 }
 0x96f   :  { %v2251_v28 = vadd.f32 %v678_v27, %v670_v7 }
 0x971   :  { %1856 = vtanh.f32 %v2251_v28 }
 0x977   :  { %v1857_v29 = vpop.eup %1856 }
 0x978   :  { %683 = vrot.lane.b32.xlu1 %v1857_v29, %s2042_s0 }
 0x9a6   :  { %v601_v12 = vpop.permute.xlu2 %600 }
 0x9a7   :  { %v603_v30 = vmul.f32 %v601_v12, %v584_v53 }
 0x9a9   :  { %712 = vrot.lane.b32.xlu1 %v603_v30, %s2043_s1 }
 0x9ae   :  { %v688_v31 = vpop.permute.xlu2 %687 }
 0x9af   :  { %1736 = vmatmul.msk.f32.vlgmr.msrb.gmra.mxu1 %vm95_vm5, %v688_v31 }
 0x9b0   :  { %1046 = vmatpush.msrb.mxu1 %v2083_v16 }
 0x9ea   :  { %v684_v32 = vpop.permute.xlu1 %683 }
 0x9eb   :  { %v686_v33 = vmul.f32 %v684_v32, %v667_v22 }
 0x9ed   :  { %795 = vrot.lane.b32.xlu0 %v686_v33, %s2043_s1 }
 0xa1b   :  { %v713_v21 = vpop.permute.xlu1 %712 }
 0xa1c   :  { %1737 = vmatmul.msk.f32.vlgmr.msrb.gmra.mxu3 %vm119_vm10, %v713_v21  ;;  %1739 = vmatmul.msk.f32.vlgmr.msra.gmra.mxu0 %vm119_vm10, %v713_v21 }
 0xa1d   :  { %1068 = vmatpush.msrb.mxu3 %v2075_v14  ;;  %1126 = vmatpush.msra.mxu0 %v2120_v62 }
 0xa1f   :  { %1069 = vmatpush.msrb.mxu3 %v2079_v15  ;;  %1127 = vmatpush.msra.mxu0 %v2124_v63 }
 0xa21   :  { %1070 = vmatpush.msrb.mxu3 %v2085_v17  ;;  %1128 = vmatpush.msra.mxu0 %v2128_v1 }
 0xa23   :  { %1071 = vmatpush.msrb.mxu3 %v2089_v18  ;;  %1129 = vmatpush.msra.mxu0 %v2137_v3 }
 0xa2c   :  { %v708_v37 = vpop.f32.mrf.mxu1 }
 0xa2d   :  { %v709_v38 = vadd.f32 %v2106_v35, %v708_v37 }
 0xa5f   :  { %v796_v36 = vpop.permute.xlu0 %795 }
 0xa60   :  { %1740 = vmatmul.msk.f32.vlgmr.msra.gmra.mxu2 %vm119_vm10, %v796_v36 }
 0xa61   :  { %1151 = vmatpush.msra.mxu2 %v2116_v60 }
 0xa63   :  { %1152 = vmatpush.msra.mxu2 %v2118_v61 }
 0xa65   :  { %1153 = vmatpush.msra.mxu2 %v2126_v0 }
 0xa67   :  { %1154 = vmatpush.msra.mxu2 %v2132_v2 }
 0xa99   :  { %v791_v42 = vpop.f32.mrf.mxu0 }
 0xa9a   :  { %v792_v43 = vadd.f32 %v2165_v9, %v791_v42 }
 0xa9f   :  { %v733_v39 = vpop.f32.mrf.mxu3 }
 0xaa0   :  { %v736_v40 = vadd.f32 %v733_v39, %v709_v38 }
 0xaa2   :  { %1858 = vtanh.f32 %v736_v40  ;;  %v1738_v47 = vmul.f32 -1.442695, %v736_v40 }
 0xaa8   :  { %v1859_v41 = vpop.eup %1858 }
 0xaa9   :  { %759 = vrot.lane.b32.xlu1 %v1859_v41, %s2042_s0 }
 0xae3   :  { %v816_v44 = vpop.f32.mrf.mxu2 }
 0xae4   :  { %v819_v45 = vadd.f32 %v816_v44, %v792_v43 }
 0xae6   :  { %1860 = vtanh.f32 %v819_v45  ;;  %v1741_v58 = vmul.f32 -1.442695, %v819_v45 }
 0xae7   :  { %1862 = vpow2.f32 %v1738_v47 }
 0xaec   :  { %v1861_v46 = vpop.eup %1860 }
 0xaed   :  { %842 = vrot.lane.b32.xlu0 %v1861_v46, %s2042_s0  ;;  %v1863_v48 = vpop.eup %1862 }
 0xaee   :  { %v740_v49 = vadd.f32 1.0, %v1863_v48 }
 0xaf0   :  { %1864 = vrcp.f32 %v740_v49  ;;  %v752_v55 = vand.u32 2147483648, %v740_v49  ;;  %vm746_vm7 = vweird.f32 %v740_v49  ;;  %v750_v56 = vand.u32 2147483647, %v740_v49 }
 0xaf1   :  { %1866 = vpow2.f32 %v1741_v58 }
 0xaf2   :  { %v753_v4 = vor.u32 1.1754944e-38, %v752_v55  ;;  %vm751_vm9 = vcmp.eq.f32.partialorder %v750_v56, 8.507059e+37 }
 0xaf6   :  { %v1865_v50 = vpop.eup %1864 }
 0xaf7   :  { %v742_v51 = vmul.f32 %v1865_v50, %v740_v49  ;;  %vm747_vm6 = vweird.f32 %v1865_v50  ;;  %v1867_v10 = vpop.eup %1866 }
 0xaf8   :  { %vm748_vm8 = vmor %vm746_vm7, %vm747_vm6  ;;  %v823_v11 = vadd.f32 1.0, %v1867_v10 }
 0xaf9   :  { %v743_v52 = vsub.f32 1.0, %v742_v51 }
 0xafa   :  { %1868 = vrcp.f32 %v823_v11  ;;  %v835_v23 = vand.u32 2147483648, %v823_v11  ;;  %vm829_vm12 = vweird.f32 %v823_v11  ;;  %v833_v24 = vand.u32 2147483647, %v823_v11 }
 0xafb   :  { %v744_v53 = vmul.f32 %v1865_v50, %v743_v52 }
 0xafc   :  { %v836_v7 = vor.u32 1.1754944e-38, %v835_v23  ;;  %vm834_vm14 = vcmp.eq.f32.partialorder %v833_v24, 8.507059e+37 }
 0xafd   :  { %v745_v54 = vadd.f32 %v1865_v50, %v744_v53 }
 0xaff   :  { %v749_v57 = vsel %vm748_vm8, %v1865_v50, %v745_v54 }
 0xb00   :  { %v754_v6 = vsel %vm751_vm9, %v753_v4, %v749_v57  ;;  %v1869_v13 = vpop.eup %1868 }
 0xb01   :  { %v825_v19 = vmul.f32 %v1869_v13, %v823_v11  ;;  %vm830_vm11 = vweird.f32 %v1869_v13  ;;  %v757_v30 = vmul.f32 %v754_v6, %v2245_v25 }
 0xb02   :  { %vm831_vm13 = vmor %vm829_vm12, %vm830_vm11 }
 0xb03   :  { %v826_v20 = vsub.f32 1.0, %v825_v19 }
 0xb05   :  { %v827_v22 = vmul.f32 %v1869_v13, %v826_v20 }
 0xb07   :  { %v828_v59 = vadd.f32 %v1869_v13, %v827_v22 }
 0xb09   :  { %v832_v26 = vsel %vm831_vm13, %v1869_v13, %v828_v59 }
 0xb0a   :  { %v837_v29 = vsel %vm834_vm14, %v836_v7, %v832_v26 }
 0xb0b   :  { %v840_v21 = vmul.f32 %v837_v29, %v2251_v28 }
 0xb1b   :  { %v760_v5 = vpop.permute.xlu1 %759 }
 0xb1c   :  { %v762_v8 = vmul.f32 %v760_v5, %v754_v6 }
 0xb1e   :  { %764 = vrot.lane.b32.xlu0 %v762_v8, %s2043_s1 }
 0xb5f   :  { %v843_v27 = vpop.permute.xlu0 %842 }
 0xb60   :  { %v845_v12 = vmul.f32 %v843_v27, %v837_v29 }
 0xb62   :  { %847 = vrot.lane.b32.xlu2 %v845_v12, %s2043_s1 }
 0xb90   :  { %v765_v31 = vpop.permute.xlu0 %764 }
 0xb91   :  { %v2281_v32 = vadd.f32 %v765_v31, %v757_v30 }
 0xb93   :  { %1870 = vtanh.f32 %v2281_v32 }
 0xb99   :  { %v1871_v33 = vpop.eup %1870 }
 0xb9a   :  { %770 = vrot.lane.b32.xlu2 %v1871_v33, %s2042_s0 }
 0xba2   :  { %857 = vrot.lane.b32.xlu2 %v2102_v34, %s2048_s25 }
 0xbbc   :  { %v848_v36 = vpop.permute.xlu2 %847 }
 0xbbd   :  { %v2287_v37 = vadd.f32 %v848_v36, %v840_v21 }
 0xbbf   :  { %1872 = vtanh.f32 %v2287_v37 }
 0xbc5   :  { %v1873_v38 = vpop.eup %1872 }
 0xbc6   :  { %853 = vrot.lane.b32.xlu1 %v1873_v38, %s2042_s0  ;;  %v1950_v38 = vld [vmem:[#allocation5 + $0x58] sm:$0xff] }
 0xbf4   :  { %v771_v25 = vpop.permute.xlu2 %770 }
 0xbf5   :  { %v773_v39 = vmul.f32 %v771_v25, %v754_v6  ;;  %v1951_v25 = vld [vmem:[#allocation5 + $0x50] sm:$0xff] }
 0xbf7   :  { %882 = vrot.lane.b32.xlu1 %v773_v39, %s2043_s1 }
 0xbfc   :  { %v858_v40 = vpop.permute.xlu2 %857 }
 0xbfd   :  { %1742 = vmatmul.msk.f32.vlgmr.msra.gmra.mxu1 %vm95_vm5, %v858_v40 }
 0xbfe   :  { %1216 = vmatpush.msra.mxu1 %v2083_v16 }
 0xc38   :  { %v854_v41 = vpop.permute.xlu1 %853 }
 0xc39   :  { %v856_v42 = vmul.f32 %v854_v41, %v837_v29  ;;  %v1952_v41 = vld [vmem:[#allocation5 + $0x78] sm:$0xff] }
 0xc3b   :  { %965 = vrot.lane.b32.xlu0 %v856_v42, %s2043_s1  ;;  %v1953_v42 = vld [vmem:[#allocation5 + $0x70] sm:$0xff] }
 0xc69   :  { %v883_v28 = vpop.permute.xlu1 %882 }
 0xc6a   :  { %1743 = vmatmul.msk.f32.vlgmr.msra.gmra.mxu3 %vm119_vm10, %v883_v28  ;;  %1745 = vmatmul.msk.f32.vlgmr.msrb.gmra.mxu0 %vm119_vm10, %v883_v28  ;;  %v1954_v28 = vld [vmem:[#allocation5 + $0x68] sm:$0xff] }
 0xc6b   :  { %1238 = vmatpush.msra.mxu3 %v2075_v14  ;;  %1296 = vmatpush.msrb.mxu0 %v2120_v62 }
 0xc6d   :  { %1239 = vmatpush.msra.mxu3 %v2079_v15  ;;  %1297 = vmatpush.msrb.mxu0 %v2124_v63 }
 0xc6f   :  { %1240 = vmatpush.msra.mxu3 %v2085_v17  ;;  %1298 = vmatpush.msrb.mxu0 %v2128_v1 }
 0xc71   :  { %1241 = vmatpush.msra.mxu3 %v2089_v18  ;;  %1299 = vmatpush.msrb.mxu0 %v2137_v3 }
 0xc7a   :  { %v878_v14 = vpop.f32.mrf.mxu1 }
 0xc7b   :  { %v879_v15 = vadd.f32 %v2106_v35, %v878_v14  ;;  %v2335_v14 = vld [vmem:[#allocation5 + $0x38] ss:$0 sm:$0xff] }
 0xcad   :  { %v966_v16 = vpop.permute.xlu0 %965 }
 0xcae   :  { %1746 = vmatmul.msk.f32.vlgmr.msrb.gmra.mxu2 %vm119_vm10, %v966_v16  ;;  %v1955_v16 = vld [vmem:[#allocation5 + $0x60] sm:$0xff] }
 0xcaf   :  { %1321 = vmatpush.msrb.mxu2 %v2116_v60 }
 0xcb1   :  { %1322 = vmatpush.msrb.mxu2 %v2118_v61 }
 0xcb3   :  { %1323 = vmatpush.msrb.mxu2 %v2126_v0 }
 0xcb5   :  { %1324 = vmatpush.msrb.mxu2 %v2132_v2 }
 0xce7   :  { %v961_v63 = vpop.f32.mrf.mxu0 }
 0xce8   :  { %v962_v43 = vadd.f32 %v2165_v9, %v961_v63 }
 0xced   :  { %v903_v17 = vpop.f32.mrf.mxu3 }
 0xcee   :  { %v906_v62 = vadd.f32 %v903_v17, %v879_v15 }
 0xcf0   :  { %1874 = vtanh.f32 %v906_v62  ;;  %v1744_v0 = vmul.f32 -1.442695, %v906_v62 }
 0xcf6   :  { %v1875_v18 = vpop.eup %1874 }
 0xcf7   :  { %929 = vrot.lane.b32.xlu1 %v1875_v18, %s2042_s0 }
 0xd31   :  { %v986_v44 = vpop.f32.mrf.mxu2 }
 0xd32   :  { %v989_v60 = vadd.f32 %v986_v44, %v962_v43 }
 0xd34   :  { %1876 = vtanh.f32 %v989_v60  ;;  %v1747_v57 = vmul.f32 -1.442695, %v989_v60 }
 0xd35   :  { %1878 = vpow2.f32 %v1744_v0 }
 0xd3a   :  { %v1877_v61 = vpop.eup %1876 }
 0xd3b   :  { %1012 = vrot.lane.b32.xlu0 %v1877_v61, %s2042_s0  ;;  %v1879_v2 = vpop.eup %1878 }
 0xd3c   :  { %v910_v45 = vadd.f32 1.0, %v1879_v2 }
 0xd3e   :  { %1880 = vrcp.f32 %v910_v45  ;;  %v922_v50 = vand.u32 2147483648, %v910_v45  ;;  %vm916_vm0 = vweird.f32 %v910_v45  ;;  %v920_v51 = vand.u32 2147483647, %v910_v45 }
 0xd3f   :  { %1882 = vpow2.f32 %v1747_v57 }
 0xd40   :  { %v923_v53 = vor.u32 1.1754944e-38, %v922_v50  ;;  %vm921_vm2 = vcmp.eq.f32.partialorder %v920_v51, 8.507059e+37 }
 0xd44   :  { %v1881_v35 = vpop.eup %1880 }
 0xd45   :  { %v912_v46 = vmul.f32 %v1881_v35, %v910_v45  ;;  %vm917_vm15 = vweird.f32 %v1881_v35  ;;  %v1883_v4 = vpop.eup %1882 }
 0xd46   :  { %vm918_vm1 = vmor %vm916_vm0, %vm917_vm15  ;;  %v993_v5 = vadd.f32 1.0, %v1883_v4 }
 0xd47   :  { %v913_v47 = vsub.f32 1.0, %v912_v46 }
 0xd48   :  { %1884 = vrcp.f32 %v993_v5  ;;  %v1005_v13 = vand.u32 2147483648, %v993_v5  ;;  %vm999_vm4 = vweird.f32 %v993_v5  ;;  %v1003_v19 = vand.u32 2147483647, %v993_v5 }
 0xd49   :  { %v914_v48 = vmul.f32 %v1881_v35, %v913_v47 }
 0xd4a   :  { %v1006_v22 = vor.u32 1.1754944e-38, %v1005_v13  ;;  %vm1004_vm7 = vcmp.eq.f32.partialorder %v1003_v19, 8.507059e+37 }
 0xd4b   :  { %v915_v49 = vadd.f32 %v1881_v35, %v914_v48 }
 0xd4d   :  { %v919_v52 = vsel %vm918_vm1, %v1881_v35, %v915_v49 }
 0xd4e   :  { %v924_v55 = vsel %vm921_vm2, %v923_v53, %v919_v52  ;;  %v1885_v6 = vpop.eup %1884 }
 0xd4f   :  { %v995_v8 = vmul.f32 %v1885_v6, %v993_v5  ;;  %vm1000_vm3 = vweird.f32 %v1885_v6  ;;  %v927_v26 = vmul.f32 %v924_v55, %v2281_v32 }
 0xd50   :  { %vm1001_vm6 = vmor %vm999_vm4, %vm1000_vm3 }
 0xd51   :  { %v996_v58 = vsub.f32 1.0, %v995_v8 }
 0xd53   :  { %v997_v10 = vmul.f32 %v1885_v6, %v996_v58 }
 0xd55   :  { %v998_v11 = vadd.f32 %v1885_v6, %v997_v10 }
 0xd57   :  { %v1002_v20 = vsel %vm1001_vm6, %v1885_v6, %v998_v11 }
 0xd58   :  { %v1007_v23 = vsel %vm1004_vm7, %v1006_v22, %v1002_v20 }
 0xd59   :  { %v1010_v12 = vmul.f32 %v1007_v23, %v2287_v37 }
 0xd69   :  { %v930_v54 = vpop.permute.xlu1 %929 }
 0xd6a   :  { %v932_v56 = vmul.f32 %v930_v54, %v924_v55 }
 0xd6c   :  { %934 = vrot.lane.b32.xlu0 %v932_v56, %s2043_s1 }
 0xdad   :  { %v1013_v59 = vpop.permute.xlu0 %1012 }
 0xdae   :  { %v1015_v24 = vmul.f32 %v1013_v59, %v1007_v23 }
 0xdb0   :  { %1017 = vrot.lane.b32.xlu2 %v1015_v24, %s2043_s1 }
 0xdde   :  { %v935_v7 = vpop.permute.xlu0 %934 }
 0xddf   :  { %v2317_v27 = vadd.f32 %v935_v7, %v927_v26 }
 0xde1   :  { %1886 = vtanh.f32 %v2317_v27 }
 0xde7   :  { %v1887_v29 = vpop.eup %1886 }
 0xde8   :  { %940 = vrot.lane.b32.xlu2 %v1887_v29, %s2042_s0 }
 0xdf0   :  { %1027 = vrot.lane.b32.xlu2 %v2102_v34, %s2049_s26 }
 0xe0a   :  { %v1018_v30 = vpop.permute.xlu2 %1017 }
 0xe0b   :  { %v2323_v31 = vadd.f32 %v1018_v30, %v1010_v12 }
 0xe0d   :  { %1888 = vtanh.f32 %v2323_v31 }
 0xe13   :  { %v1889_v33 = vpop.eup %1888 }
 0xe14   :  { %1023 = vrot.lane.b32.xlu1 %v1889_v33, %s2042_s0 }
 0xe42   :  { %v941_v32 = vpop.permute.xlu2 %940 }
 0xe43   :  { %v943_v21 = vmul.f32 %v941_v32, %v924_v55 }
 0xe45   :  { %1052 = vrot.lane.b32.xlu1 %v943_v21, %s2043_s1 }
 0xe4a   :  { %v1028_v36 = vpop.permute.xlu2 %1027 }
 0xe4b   :  { %1748 = vmatmul.msk.f32.vlgmr.msrb.gmra.mxu1 %vm95_vm5, %v1028_v36 }
 0xe4c   :  { %1384 = vmatpush.msrb.mxu1 %v1950_v38 }
 0xe4e   :  { %1385 = vmatpush.msrb.mxu1 %v1951_v25 }
 0xe50   :  { %1386 = vmatpush.msrb.mxu1 %v2128_v1 }
 0xe52   :  { %1387 = vmatpush.msrb.mxu1 %v2137_v3 }
 0xe86   :  { %v1024_v37 = vpop.permute.xlu1 %1023 }
 0xe87   :  { %v1026_v39 = vmul.f32 %v1024_v37, %v1007_v23 }
 0xe89   :  { %1135 = vrot.lane.b32.xlu0 %v1026_v39, %s2043_s1 }
 0xeb7   :  { %v1053_v40 = vpop.permute.xlu1 %1052 }
 0xeb8   :  { %1749 = vmatmul.msk.f32.vlgmr.msrb.gmra.mxu3 %vm119_vm10, %v1053_v40  ;;  %1751 = vmatmul.msk.f32.vlgmr.msra.gmra.mxu0 %vm119_vm10, %v1053_v40 }
 0xeb9   :  { %1409 = vmatpush.msrb.mxu3 %v1952_v41 }
 0xebb   :  { %1410 = vmatpush.msrb.mxu3 %v1953_v42 }
 0xebd   :  { %1411 = vmatpush.msrb.mxu3 %v1954_v28 }
 0xebf   :  { %1412 = vmatpush.msrb.mxu3 %v1955_v16  ;;  %v2362_v16 = vld [vmem:[#allocation5 + $0x80] ss:$0 sm:$0xff] }
 0xec8   :  { %v1048_v3 = vpop.f32.mrf.mxu1 }
 0xec9   :  { %v1049_v15 = vadd.f32 %v2335_v14, %v1048_v3 }
 0xefb   :  { %v1136_v1 = vpop.permute.xlu0 %1135 }
 0xefc   :  { %1752 = vmatmul.msk.f32.vlgmr.msra.gmra.mxu2 %vm119_vm10, %v1136_v1 }
 0xf35   :  { %v1131_v63 = vpop.f32.mrf.mxu0 }
 0xf36   :  { %v1132_v43 = vadd.f32 %v2165_v9, %v1131_v63 }
 0xf3b   :  { %v1073_v17 = vpop.f32.mrf.mxu3 }
 0xf3c   :  { %v1076_v62 = vadd.f32 %v1073_v17, %v1049_v15 }
 0xf3e   :  { %1890 = vtanh.f32 %v1076_v62  ;;  %v1750_v0 = vmul.f32 -1.442695, %v1076_v62 }
 0xf44   :  { %v1891_v18 = vpop.eup %1890 }
 0xf45   :  { %1099 = vrot.lane.b32.xlu1 %v1891_v18, %s2042_s0 }
 0xf7f   :  { %v1156_v44 = vpop.f32.mrf.mxu2 }
 0xf80   :  { %v1159_v60 = vadd.f32 %v1156_v44, %v1132_v43 }
 0xf82   :  { %1892 = vtanh.f32 %v1159_v60  ;;  %v1753_v56 = vmul.f32 -1.442695, %v1159_v60 }
 0xf83   :  { %1894 = vpow2.f32 %v1750_v0 }
 0xf88   :  { %v1893_v61 = vpop.eup %1892 }
 0xf89   :  { %1182 = vrot.lane.b32.xlu0 %v1893_v61, %s2042_s0  ;;  %v1895_v2 = vpop.eup %1894 }
 0xf8a   :  { %v1080_v45 = vadd.f32 1.0, %v1895_v2 }
 0xf8c   :  { %1896 = vrcp.f32 %v1080_v45  ;;  %v1092_v50 = vand.u32 2147483648, %v1080_v45  ;;  %vm1086_vm9 = vweird.f32 %v1080_v45  ;;  %v1090_v9 = vand.u32 2147483647, %v1080_v45 }
 0xf8d   :  { %1898 = vpow2.f32 %v1753_v56 }
 0xf8e   :  { %v1093_v52 = vor.u32 1.1754944e-38, %v1092_v50  ;;  %vm1091_vm12 = vcmp.eq.f32.partialorder %v1090_v9, 8.507059e+37 }
 0xf92   :  { %v1897_v35 = vpop.eup %1896 }
 0xf93   :  { %v1082_v46 = vmul.f32 %v1897_v35, %v1080_v45  ;;  %vm1087_vm8 = vweird.f32 %v1897_v35  ;;  %v1899_v57 = vpop.eup %1898 }
 0xf94   :  { %vm1088_vm11 = vmor %vm1086_vm9, %vm1087_vm8  ;;  %v1163_v4 = vadd.f32 1.0, %v1899_v57 }
 0xf95   :  { %v1083_v47 = vsub.f32 1.0, %v1082_v46 }
 0xf96   :  { %1900 = vrcp.f32 %v1163_v4  ;;  %v1175_v11 = vand.u32 2147483648, %v1163_v4  ;;  %vm1169_vm14 = vweird.f32 %v1163_v4  ;;  %v1173_v13 = vand.u32 2147483647, %v1163_v4 }
 0xf97   :  { %v1084_v48 = vmul.f32 %v1897_v35, %v1083_v47 }
 0xf98   :  { %v1176_v20 = vor.u32 1.1754944e-38, %v1175_v11  ;;  %vm1174_vm0 = vcmp.eq.f32.partialorder %v1173_v13, 8.507059e+37 }
 0xf99   :  { %v1085_v49 = vadd.f32 %v1897_v35, %v1084_v48 }
 0xf9b   :  { %v1089_v51 = vsel %vm1088_vm11, %v1897_v35, %v1085_v49 }
 0xf9c   :  { %v1094_v54 = vsel %vm1091_vm12, %v1093_v52, %v1089_v51  ;;  %v1901_v5 = vpop.eup %1900 }
 0xf9d   :  { %v1165_v6 = vmul.f32 %v1901_v5, %v1163_v4  ;;  %vm1170_vm13 = vweird.f32 %v1901_v5  ;;  %v1097_v24 = vmul.f32 %v1094_v54, %v2317_v27 }
 0xf9e   :  { %vm1171_vm15 = vmor %vm1169_vm14, %vm1170_vm13 }
 0xf9f   :  { %v1166_v8 = vsub.f32 1.0, %v1165_v6 }
 0xfa1   :  { %v1167_v58 = vmul.f32 %v1901_v5, %v1166_v8 }
 0xfa3   :  { %v1168_v10 = vadd.f32 %v1901_v5, %v1167_v58 }
 0xfa5   :  { %v1172_v19 = vsel %vm1171_vm15, %v1901_v5, %v1168_v10 }
 0xfa6   :  { %v1177_v59 = vsel %vm1174_vm0, %v1176_v20, %v1172_v19 }
 0xfa7   :  { %v1180_v12 = vmul.f32 %v1177_v59, %v2323_v31 }
 0xfb7   :  { %v1100_v53 = vpop.permute.xlu1 %1099 }
 0xfb8   :  { %v1102_v55 = vmul.f32 %v1100_v53, %v1094_v54 }
 0xfba   :  { %1104 = vrot.lane.b32.xlu0 %v1102_v55, %s2043_s1 }
 0xffb   :  { %v1183_v22 = vpop.permute.xlu0 %1182 }
 0xffc   :  { %v1185_v23 = vmul.f32 %v1183_v22, %v1177_v59 }
 0xffe   :  { %1187 = vrot.lane.b32.xlu2 %v1185_v23, %s2043_s1 }
0x102c   :  { %v1105_v26 = vpop.permute.xlu0 %1104 }
0x102d   :  { %v2344_v7 = vadd.f32 %v1105_v26, %v1097_v24 }
0x102f   :  { %1902 = vtanh.f32 %v2344_v7 }
0x1035   :  { %v1903_v29 = vpop.eup %1902 }
0x1036   :  { %1110 = vrot.lane.b32.xlu2 %v1903_v29, %s2042_s0 }
0x103e   :  { %1197 = vrot.lane.b32.xlu2 %v2102_v34, %s2050_s27 }
0x1058   :  { %v1188_v30 = vpop.permute.xlu2 %1187 }
0x1059   :  { %v2350_v33 = vadd.f32 %v1188_v30, %v1180_v12 }
0x105b   :  { %1904 = vtanh.f32 %v2350_v33 }
0x1061   :  { %v1905_v32 = vpop.eup %1904 }
0x1062   :  { %1193 = vrot.lane.b32.xlu1 %v1905_v32, %s2042_s0 }
0x1090   :  { %v1111_v27 = vpop.permute.xlu2 %1110 }
0x1091   :  { %v1113_v21 = vmul.f32 %v1111_v27, %v1094_v54 }
0x1093   :  { %1222 = vrot.lane.b32.xlu1 %v1113_v21, %s2043_s1 }
0x1098   :  { %v1198_v36 = vpop.permute.xlu2 %1197 }
0x1099   :  { %1754 = vmatmul.msk.f32.vlgmr.msra.gmra.mxu1 %vm95_vm5, %v1198_v36 }
0x10d4   :  { %v1194_v38 = vpop.permute.xlu1 %1193 }
0x10d5   :  { %v1196_v25 = vmul.f32 %v1194_v38, %v1177_v59 }
0x10d7   :  { %1305 = vrot.lane.b32.xlu0 %v1196_v25, %s2043_s1 }
0x1105   :  { %v1223_v34 = vpop.permute.xlu1 %1222 }
0x1106   :  { %1755 = vmatmul.msk.f32.vlgmr.msra.gmra.mxu3 %vm119_vm10, %v1223_v34  ;;  %1757 = vmatmul.msk.f32.vlgmr.msrb.gmra.mxu0 %vm119_vm10, %v1223_v34 }
0x1116   :  { %v1218_v37 = vpop.f32.mrf.mxu1 }
0x1117   :  { %v1219_v39 = vadd.f32 %v2335_v14, %v1218_v37 }
0x1149   :  { %v1306_v31 = vpop.permute.xlu0 %1305 }
0x114a   :  { %1758 = vmatmul.msk.f32.vlgmr.msrb.gmra.mxu2 %vm119_vm10, %v1306_v31 }
0x1183   :  { %v1301_v28 = vpop.f32.mrf.mxu0 }
0x1184   :  { %v1302_v1 = vadd.f32 %v2362_v16, %v1301_v28 }
0x1189   :  { %v1243_v40 = vpop.f32.mrf.mxu3 }
0x118a   :  { %v1246_v41 = vadd.f32 %v1243_v40, %v1219_v39 }
0x118c   :  { %1906 = vtanh.f32 %v1246_v41  ;;  %v1756_v62 = vmul.f32 -1.442695, %v1246_v41 }
0x1192   :  { %v1907_v42 = vpop.eup %1906 }
0x1193   :  { %1269 = vrot.lane.b32.xlu1 %v1907_v42, %s2042_s0 }
0x11cd   :  { %v1326_v3 = vpop.f32.mrf.mxu2 }
0x11ce   :  { %v1329_v15 = vadd.f32 %v1326_v3, %v1302_v1 }
0x11d0   :  { %1908 = vtanh.f32 %v1329_v15  ;;  %v1759_v49 = vmul.f32 -1.442695, %v1329_v15 }
0x11d1   :  { %1910 = vpow2.f32 %v1756_v62 }
0x11d6   :  { %v1909_v17 = vpop.eup %1908 }
0x11d7   :  { %1352 = vrot.lane.b32.xlu0 %v1909_v17, %s2042_s0  ;;  %v1911_v14 = vpop.eup %1910 }
0x11d8   :  { %v1250_v18 = vadd.f32 1.0, %v1911_v14 }
0x11da   :  { %1912 = vrcp.f32 %v1250_v18  ;;  %v1262_v0 = vand.u32 2147483648, %v1250_v18  ;;  %vm1256_vm1 = vweird.f32 %v1250_v18  ;;  %v1260_v2 = vand.u32 2147483647, %v1250_v18 }
0x11db   :  { %1914 = vpow2.f32 %v1759_v49  ;;  %v1793_v49 = vld [vmem:[#allocation5 + $0xa8] ss:$0 sm:$0xff] }
0x11dc   :  { %v1263_v35 = vor.u32 1.1754944e-38, %v1262_v0  ;;  %vm1261_vm3 = vcmp.eq.f32.partialorder %v1260_v2, 8.507059e+37 }
0x11e0   :  { %v1913_v63 = vpop.eup %1912 }
0x11e1   :  { %v1252_v43 = vmul.f32 %v1913_v63, %v1250_v18  ;;  %vm1257_vm5 = vweird.f32 %v1913_v63  ;;  %v1915_v50 = vpop.eup %1914 }
0x11e2   :  { %vm1258_vm2 = vmor %vm1256_vm1, %vm1257_vm5  ;;  %v1333_v9 = vadd.f32 1.0, %v1915_v50 }
0x11e3   :  { %v1253_v44 = vsub.f32 1.0, %v1252_v43  ;;  %v1458_v43 = vld [vmem:[#allocation5 + $0xa0] sm:$0xff] }
0x11e4   :  { %1916 = vrcp.f32 %v1333_v9  ;;  %v1345_v56 = vand.u32 2147483648, %v1333_v9  ;;  %vm1339_vm6 = vweird.f32 %v1333_v9  ;;  %v1343_v57 = vand.u32 2147483647, %v1333_v9  ;;  %1478 = vmatpush.msra.mxu0 %v1458_v43 }
0x11e5   :  { %v1254_v60 = vmul.f32 %v1913_v63, %v1253_v44  ;;  %v1457_v44 = vld [vmem:[#allocation5 + $0x98] sm:$0xff] }
0x11e6   :  { %v1346_v5 = vor.u32 1.1754944e-38, %v1345_v56  ;;  %vm1344_vm8 = vcmp.eq.f32.partialorder %v1343_v57, 8.507059e+37  ;;  %1479 = vmatpush.msra.mxu0 %v1457_v44 }
0x11e7   :  { %v1255_v61 = vadd.f32 %v1913_v63, %v1254_v60  ;;  %v1456_v60 = vld [vmem:[#allocation5 + $0x90] sm:$0xff] }
0x11e8   :  { %1480 = vmatpush.msra.mxu0 %v1456_v60 }
0x11e9   :  { %v1259_v45 = vsel %vm1258_vm2, %v1913_v63, %v1255_v61  ;;  %v1455_v61 = vld [vmem:[#allocation5 + $0x88] sm:$0xff] }
0x11ea   :  { %v1264_v47 = vsel %vm1261_vm3, %v1263_v35, %v1259_v45  ;;  %v1917_v51 = vpop.eup %1916  ;;  %1481 = vmatpush.msra.mxu0 %v1455_v61  ;;  %v1508_v35 = vld [vmem:[#allocation5 + $0xc8] sm:$0xff]  ;;  %v1652_v61 = vld [vmem:[#allocation5 + $0x140] sm:$0xff] }
0x11eb   :  { %v1335_v52 = vmul.f32 %v1917_v51, %v1333_v9  ;;  %vm1340_vm4 = vweird.f32 %v1917_v51  ;;  %v1267_v10 = vmul.f32 %v1264_v47, %v2344_v7  ;;  %1526 = vmatpush.msra.mxu2 %v1508_v35  ;;  %v1796_v35 = vld [vmem:[#allocation5 + $0x120] ss:$0 sm:$0xff] }
0x11ec   :  { %vm1341_vm7 = vmor %vm1339_vm6, %vm1340_vm4  ;;  %1670 = vmatpush.msrb.mxu0 %v1652_v61 }
0x11ed   :  { %v1336_v53 = vsub.f32 1.0, %v1335_v52 }
0x11ef   :  { %v1337_v54 = vmul.f32 %v1917_v51, %v1336_v53 }
0x11f1   :  { %v1338_v55 = vadd.f32 %v1917_v51, %v1337_v54 }
0x11f3   :  { %v1342_v4 = vsel %vm1341_vm7, %v1917_v51, %v1338_v55 }
0x11f4   :  { %v1347_v8 = vsel %vm1344_vm8, %v1346_v5, %v1342_v4 }
0x11f5   :  { %v1350_v20 = vmul.f32 %v1347_v8, %v2350_v33 }
0x1205   :  { %v1270_v46 = vpop.permute.xlu1 %1269 }
0x1206   :  { %v1272_v48 = vmul.f32 %v1270_v46, %v1264_v47  ;;  %v1507_v46 = vld [vmem:[#allocation5 + $0xc0] sm:$0xff] }
0x1207   :  { %1527 = vmatpush.msra.mxu2 %v1507_v46 }
0x1208   :  { %1274 = vrot.lane.b32.xlu0 %v1272_v48, %s2043_s1  ;;  %v1505_v48 = vld [vmem:[#allocation5 + $0xb0] sm:$0xff] }
0x1249   :  { %v1353_v6 = vpop.permute.xlu0 %1352 }
0x124a   :  { %v1355_v58 = vmul.f32 %v1353_v6, %v1347_v8 }
0x124c   :  { %1357 = vrot.lane.b32.xlu2 %v1355_v58, %s2043_s1 }
0x127a   :  { %v1275_v11 = vpop.permute.xlu0 %1274 }
0x127b   :  { %v1277_v13 = vadd.f32 %v1275_v11, %v1267_v10  ;;  %v1556_v11 = vld [vmem:[#allocation5 + $0xf0] sm:$0xff] }
0x127c   :  { %1574 = vmatpush.msra.mxu1 %v1556_v11 }
0x127d   :  { %1918 = vtanh.f32 %v1277_v13  ;;  %v1555_v13 = vld [vmem:[#allocation5 + $0xe8] sm:$0xff] }
0x127e   :  { %1575 = vmatpush.msra.mxu1 %v1555_v13 }
0x1283   :  { %v1919_v19 = vpop.eup %1918 }
0x1284   :  { %1280 = vrot.lane.b32.xlu2 %v1919_v19, %s2042_s0  ;;  %v1554_v19 = vld [vmem:[#allocation5 + $0xe0] sm:$0xff] }
0x1285   :  { %1576 = vmatpush.msra.mxu1 %v1554_v19 }
0x12a6   :  { %v1358_v22 = vpop.permute.xlu2 %1357 }
0x12a7   :  { %v1360_v59 = vadd.f32 %v1358_v22, %v1350_v20  ;;  %v1553_v20 = vld [vmem:[#allocation5 + $0xd8] sm:$0xff]  ;;  %v1794_v22 = vld [vmem:[#allocation5 + $0xd0] ss:$0 sm:$0xff] }
0x12a8   :  { %1577 = vmatpush.msra.mxu1 %v1553_v20 }
0x12a9   :  { %1920 = vtanh.f32 %v1360_v59 }
0x12af   :  { %v1921_v23 = vpop.eup %1920 }
0x12b0   :  { %1363 = vrot.lane.b32.xlu1 %v1921_v23, %s2042_s0 }
0x12de   :  { %v1281_v24 = vpop.permute.xlu2 %1280 }
0x12df   :  { %v1283_v26 = vmul.f32 %v1281_v24, %v1264_v47  ;;  %v1506_v47 = vld [vmem:[#allocation5 + $0xb8] sm:$0xff] }
0x12e0   :  { %1528 = vmatpush.msra.mxu2 %v1506_v47 }
0x12e1   :  { %1368 = vrot.lane.b32.xlu1 %v1283_v26, %s2043_s1 }
0x12e2   :  { %1529 = vmatpush.msra.mxu2 %v1505_v48 }
0x1322   :  { %v1364_v29 = vpop.permute.xlu1 %1363 }
0x1323   :  { %v1366_v7 = vmul.f32 %v1364_v29, %v1347_v8 }
0x1325   :  { %1393 = vrot.lane.b32.xlu0 %v1366_v7, %s2043_s1 }
0x1353   :  { %v1369_v12 = vpop.permute.xlu1 %1368 }
0x1354   :  { %1760 = vmatmul.msk.f32.vlgmr.msrb.gmra.mxu1 %vm119_vm10, %v1369_v12 }
0x1397   :  { %v1394_v30 = vpop.permute.xlu0 %1393 }
0x1398   :  { %1761 = vmatmul.msk.f32.vlgmr.msrb.gmra.mxu3 %vm119_vm10, %v1394_v30 }
0x13d1   :  { %v1389_v33 = vpop.f32.mrf.mxu1 }
0x13d2   :  { %v1390_v32 = vadd.f32 %v2362_v16, %v1389_v33 }
0x141b   :  { %v1414_v27 = vpop.f32.mrf.mxu3 }
0x141c   :  { %v1417_v21 = vadd.f32 %v1414_v27, %v1390_v32 }
0x141e   :  { %1922 = vtanh.f32 %v1417_v21  ;;  %v1762_v38 = vmul.f32 -1.442695, %v1417_v21 }
0x1420   :  { %1924 = vpow2.f32 %v1762_v38 }
0x1424   :  { %v1923_v36 = vpop.eup %1922 }
0x1425   :  { %1440 = vrot.lane.b32.xlu2 %v1923_v36, %s2042_s0 }
0x1426   :  { %v1925_v25 = vpop.eup %1924 }
0x1427   :  { %v1421_v34 = vadd.f32 1.0, %v1925_v25 }
0x1429   :  { %1926 = vrcp.f32 %v1421_v34  ;;  %v1433_v42 = vand.u32 2147483648, %v1421_v34  ;;  %vm1427_vm11 = vweird.f32 %v1421_v34  ;;  %v1431_v28 = vand.u32 2147483647, %v1421_v34 }
0x142b   :  { %v1434_v1 = vor.u32 1.1754944e-38, %v1433_v42  ;;  %vm1432_vm13 = vcmp.eq.f32.partialorder %v1431_v28, 8.507059e+37 }
0x142f   :  { %v1927_v31 = vpop.eup %1926 }
0x1430   :  { %v1423_v37 = vmul.f32 %v1927_v31, %v1421_v34  ;;  %vm1428_vm9 = vweird.f32 %v1927_v31  ;;  %v1604_v34 = vld [vmem:[#allocation5 + $0x118] sm:$0xff] }
0x1431   :  { %vm1429_vm12 = vmor %vm1427_vm11, %vm1428_vm9  ;;  %1622 = vmatpush.msra.mxu3 %v1604_v34 }
0x1432   :  { %v1424_v39 = vsub.f32 1.0, %v1423_v37  ;;  %v1602_v37 = vld [vmem:[#allocation5 + $0x108] sm:$0xff] }
0x1434   :  { %v1425_v40 = vmul.f32 %v1927_v31, %v1424_v39  ;;  %v1601_v39 = vld [vmem:[#allocation5 + $0x100] sm:$0xff] }
0x1436   :  { %v1426_v41 = vadd.f32 %v1927_v31, %v1425_v40  ;;  %v1795_v40 = vld [vmem:[#allocation5 + $0xf8] ss:$0 sm:$0xff] }
0x1438   :  { %v1430_v16 = vsel %vm1429_vm12, %v1927_v31, %v1426_v41  ;;  %v1603_v31 = vld [vmem:[#allocation5 + $0x110] sm:$0xff] }
0x1439   :  { %v1435_v15 = vsel %vm1432_vm13, %v1434_v1, %v1430_v16  ;;  %1623 = vmatpush.msra.mxu3 %v1603_v31 }
0x143a   :  { %v1438_v62 = vmul.f32 %v1435_v15, %v1360_v59 }
0x143b   :  { %1624 = vmatpush.msra.mxu3 %v1602_v37 }
0x143d   :  { %1625 = vmatpush.msra.mxu3 %v1601_v39 }
0x147f   :  { %v1441_v3 = vpop.permute.xlu2 %1440 }
0x1480   :  { %v1443_v17 = vmul.f32 %v1441_v3, %v1435_v15 }
0x1482   :  { %1445 = vrot.lane.b32.xlu0 %v1443_v17, %s2043_s1 }
0x14f4   :  { %v1446_v14 = vpop.permute.xlu0 %1445 }
0x14f5   :  { %v1448_v18 = vadd.f32 %v1446_v14, %v1438_v62 }
0x14f7   :  { %1928 = vtanh.f32 %v1448_v18 }
0x14fd   :  { %v1929_v63 = vpop.eup %1928 }
0x14fe   :  { %1451 = vrot.lane.b32.xlu1 %v1929_v63, %s2042_s0 }
0x1570   :  { %v1452_v0 = vpop.permute.xlu1 %1451 }
0x1571   :  { %v1454_v2 = vmul.f32 %v1452_v0, %v1435_v15  ;;  %v1651_v0 = vld [vmem:[#allocation5 + $0x138] sm:$0xff] }
0x1572   :  { %1671 = vmatpush.msrb.mxu0 %v1651_v0 }
0x1573   :  { %1462 = vrot.lane.b32.xlu2 %v1454_v2, %s2043_s1  ;;  %v1650_v2 = vld [vmem:[#allocation5 + $0x130] sm:$0xff] }
0x1574   :  { %1672 = vmatpush.msrb.mxu0 %v1650_v2 }
0x15cd   :  { %v1463_v45 = vpop.permute.xlu2 %1462 }
0x15ce   :  { %1763 = vmatmul.msk.f32.vlgmr.msra.gmra.mxu0 %vm119_vm10, %v1463_v45  ;;  %v1649_v45 = vld [vmem:[#allocation5 + $0x128] sm:$0xff] }
0x15cf   :  { %1673 = vmatpush.msrb.mxu0 %v1649_v45 }
0x164b   :  { %v1483_v50 = vpop.f32.mrf.mxu0 }
0x164c   :  { %v1484_v9 = vadd.f32 %v1793_v49, %v1483_v50 }
0x164e   :  { %v1764_v51 = vmul.f32 -1.442695, %v1484_v9 }
0x1650   :  { %1930 = vpow2.f32 %v1764_v51 }
0x1656   :  { %v1931_v52 = vpop.eup %1930 }
0x1657   :  { %v1489_v53 = vadd.f32 1.0, %v1931_v52 }
0x1659   :  { %1932 = vrcp.f32 %v1489_v53  ;;  %v1501_v57 = vand.u32 2147483648, %v1489_v53  ;;  %v1499_v5 = vand.u32 2147483647, %v1489_v53  ;;  %vm1495_vm15 = vweird.f32 %v1489_v53 }
0x165b   :  { %v1502_v8 = vor.u32 1.1754944e-38, %v1501_v57  ;;  %vm1500_vm5 = vcmp.eq.f32.partialorder %v1499_v5, 8.507059e+37 }
0x165f   :  { %v1933_v54 = vpop.eup %1932 }
0x1660   :  { %v1491_v55 = vmul.f32 %v1933_v54, %v1489_v53  ;;  %vm1496_vm14 = vweird.f32 %v1933_v54 }
0x1661   :  { %vm1497_vm0 = vmor %vm1495_vm15, %vm1496_vm14 }
0x1662   :  { %v1492_v56 = vsub.f32 1.0, %v1491_v55 }
0x1664   :  { %v1493_v4 = vmul.f32 %v1933_v54, %v1492_v56 }
0x1666   :  { %v1494_v6 = vadd.f32 %v1933_v54, %v1493_v4 }
0x1668   :  { %v1498_v58 = vsel %vm1497_vm0, %v1933_v54, %v1494_v6  ;;  %v1797_v6 = vld [vmem:[#allocation5 + $0x148] ss:$0 sm:$0xff] }
0x1669   :  { %v1503_v10 = vsel %vm1500_vm5, %v1502_v8, %v1498_v58  ;;  %vm1697_vm5 = vcmask 25600  }
0x166a   :  { %1765 = vmatmul.msk.f32.vlgmr.msra.gmra.mxu2 %vm119_vm10, %v1503_v10 }
0x16ed   :  { %v1531_v59 = vpop.f32.mrf.mxu2 }
0x16ee   :  { %v1532_v23 = vadd.f32 %v1794_v22, %v1531_v59 }
0x16f0   :  { %v1766_v24 = vmul.f32 -1.442695, %v1532_v23 }
0x16f2   :  { %1934 = vpow2.f32 %v1766_v24 }
0x16f8   :  { %v1935_v26 = vpop.eup %1934 }
0x16f9   :  { %v1537_v29 = vadd.f32 1.0, %v1935_v26 }
0x16fb   :  { %1936 = vrcp.f32 %v1537_v29  ;;  %v1549_v33 = vand.u32 2147483648, %v1537_v29  ;;  %v1547_v27 = vand.u32 2147483647, %v1537_v29  ;;  %vm1543_vm2 = vweird.f32 %v1537_v29 }
0x16fd   :  { %v1550_v36 = vor.u32 1.1754944e-38, %v1549_v33  ;;  %vm1548_vm4 = vcmp.eq.f32.partialorder %v1547_v27, 8.507059e+37 }
0x1701   :  { %v1937_v7 = vpop.eup %1936 }
0x1702   :  { %v1539_v12 = vmul.f32 %v1937_v7, %v1537_v29  ;;  %vm1544_vm1 = vweird.f32 %v1937_v7 }
0x1703   :  { %vm1545_vm3 = vmor %vm1543_vm2, %vm1544_vm1 }
0x1704   :  { %v1540_v30 = vsub.f32 1.0, %v1539_v12 }
0x1706   :  { %v1541_v32 = vmul.f32 %v1937_v7, %v1540_v30 }
0x1708   :  { %v1542_v21 = vadd.f32 %v1937_v7, %v1541_v32 }
0x170a   :  { %v1546_v38 = vsel %vm1545_vm3, %v1937_v7, %v1542_v21 }
0x170b   :  { %v1551_v25 = vsel %vm1548_vm4, %v1550_v36, %v1546_v38 }
0x170c   :  { %1767 = vmatmul.msk.f32.vlgmr.msra.gmra.mxu1 %vm119_vm10, %v1551_v25 }
0x1789   :  { %v1579_v41 = vpop.f32.mrf.mxu1 }
0x178a   :  { %v1580_v42 = vadd.f32 %v1795_v40, %v1579_v41 }
0x178c   :  { %v1768_v28 = vmul.f32 -1.442695, %v1580_v42 }
0x178e   :  { %1938 = vpow2.f32 %v1768_v28 }
0x1794   :  { %v1939_v16 = vpop.eup %1938 }
0x1795   :  { %v1585_v1 = vadd.f32 1.0, %v1939_v16 }
0x1797   :  { %1940 = vrcp.f32 %v1585_v1  ;;  %v1597_v62 = vand.u32 2147483648, %v1585_v1  ;;  %v1595_v18 = vand.u32 2147483647, %v1585_v1  ;;  %vm1591_vm7 = vweird.f32 %v1585_v1 }
0x1799   :  { %v1598_v43 = vor.u32 1.1754944e-38, %v1597_v62  ;;  %vm1596_vm9 = vcmp.eq.f32.partialorder %v1595_v18, 8.507059e+37 }
0x179d   :  { %v1941_v3 = vpop.eup %1940 }
0x179e   :  { %v1587_v15 = vmul.f32 %v1941_v3, %v1585_v1  ;;  %vm1592_vm6 = vweird.f32 %v1941_v3 }
0x179f   :  { %vm1593_vm8 = vmor %vm1591_vm7, %vm1592_vm6 }
0x17a0   :  { %v1588_v17 = vsub.f32 1.0, %v1587_v15 }
0x17a2   :  { %v1589_v14 = vmul.f32 %v1941_v3, %v1588_v17 }
0x17a4   :  { %v1590_v63 = vadd.f32 %v1941_v3, %v1589_v14 }
0x17a6   :  { %v1594_v44 = vsel %vm1593_vm8, %v1941_v3, %v1590_v63 }
0x17a7   :  { %v1599_v60 = vsel %vm1596_vm9, %v1598_v43, %v1594_v44 }
0x17a8   :  { %1769 = vmatmul.msk.f32.vlgmr.msra.gmra.mxu3 %vm119_vm10, %v1599_v60 }
0x182b   :  { %v1627_v46 = vpop.f32.mrf.mxu3 }
0x182c   :  { %v1628_v47 = vadd.f32 %v1796_v35, %v1627_v46 }
0x182e   :  { %v1770_v48 = vmul.f32 -1.442695, %v1628_v47 }
0x1830   :  { %1942 = vpow2.f32 %v1770_v48 }
0x1836   :  { %v1943_v49 = vpop.eup %1942 }
0x1837   :  { %v1633_v50 = vadd.f32 1.0, %v1943_v49 }
0x1839   :  { %1944 = vrcp.f32 %v1633_v50  ;;  %v1645_v53 = vand.u32 2147483648, %v1633_v50  ;;  %v1643_v55 = vand.u32 2147483647, %v1633_v50  ;;  %vm1639_vm12 = vweird.f32 %v1633_v50 }
0x183b   :  { %v1646_v57 = vor.u32 1.1754944e-38, %v1645_v53  ;;  %vm1644_vm14 = vcmp.eq.f32.partialorder %v1643_v55, 8.507059e+37 }
0x183f   :  { %v1945_v9 = vpop.eup %1944 }
0x1840   :  { %v1635_v51 = vmul.f32 %v1945_v9, %v1633_v50  ;;  %vm1640_vm11 = vweird.f32 %v1945_v9 }
0x1841   :  { %vm1641_vm13 = vmor %vm1639_vm12, %vm1640_vm11 }
0x1842   :  { %v1636_v52 = vsub.f32 1.0, %v1635_v51 }
0x1844   :  { %v1637_v54 = vmul.f32 %v1945_v9, %v1636_v52 }
0x1846   :  { %v1638_v56 = vadd.f32 %v1945_v9, %v1637_v54 }
0x1848   :  { %v1642_v4 = vsel %vm1641_vm13, %v1945_v9, %v1638_v56 }
0x1849   :  { %v1647_v5 = vsel %vm1644_vm14, %v1646_v57, %v1642_v4 }
0x184a   :  { %1771 = vmatmul.msk.f32.vlgmr.msrb.gmra.mxu0 %vm119_vm10, %v1647_v5 }
0x18c7   :  { %v1675_v8 = vpop.f32.mrf.mxu0 }
0x18c8   :  { %v1676_v58 = vadd.f32 %v1797_v6, %v1675_v8 }
0x18ca   :  { %v1772_v10 = vmul.f32 -1.442695, %v1676_v58 }
0x18cc   :  { %1946 = vpow2.f32 %v1772_v10 }
0x18d2   :  { %v1947_v11 = vpop.eup %1946 }
0x18d3   :  { %v1681_v13 = vadd.f32 1.0, %v1947_v11 }
0x18d5   :  { %1948 = vrcp.f32 %v1681_v13  ;;  %v1693_v59 = vand.u32 2147483648, %v1681_v13  ;;  %v1691_v24 = vand.u32 2147483647, %v1681_v13  ;;  %vm1687_vm10 = vweird.f32 %v1681_v13 }
0x18d7   :  { %v1694_v29 = vor.u32 1.1754944e-38, %v1693_v59  ;;  %vm1692_vm1 = vcmp.eq.f32.partialorder %v1691_v24, 8.507059e+37 }
0x18db   :  { %v1949_v19 = vpop.eup %1948 }
0x18dc   :  { %v1683_v20 = vmul.f32 %v1949_v19, %v1681_v13  ;;  %vm1688_vm15 = vweird.f32 %v1949_v19 }
0x18dd   :  { %vm1689_vm0 = vmor %vm1687_vm10, %vm1688_vm15 }
0x18de   :  { %v1684_v22 = vsub.f32 1.0, %v1683_v20 }
0x18e0   :  { %v1685_v23 = vmul.f32 %v1949_v19, %v1684_v22 }
0x18e2   :  { %v1686_v26 = vadd.f32 %v1949_v19, %v1685_v23 }
0x18e4   :  { %v1690_v7 = vsel %vm1689_vm0, %v1949_v19, %v1686_v26 }
0x18e5   :  { %v1695_v12 = vsel %vm1692_vm1, %v1694_v29, %v1690_v7 }
0x18e6   :  { %1698 = vst.msk [vmem:[#allocation7] sm:$0x3] %vm1697_vm5, %v1695_v12 }
0x18e7   :  { %1709 = dma.vmem_to_hbm [thread:$0]  %s1705_s29, 32, %s1707_s4, [#allocation4]  }
0x18e8   :  { %2034 = dma.done.wait [#allocation4], 32  }
0x18e9   :  { %2035 = vsyncadd [#allocation4], 4294967264 }
0x18ea   :  { %1714 = vsyncpa [#allocation3], 1 }
0x18eb   :  { %1715 = vsyncpa [#allocation6], 1 }
0x18ec   :  { %1716 = vsyncpa [#allocation4], 1 }

</bundles_post_ra>
